<compile_context>
chip_gen: v7x
topology: tpu7x:2x2x1
jax: 0.10.0
libtpu: 0.0.40
codegen_flags: <defaults>
</compile_context>

<pallas_src>
import functools

import jax
import jax.numpy as jnp
from jax import lax
from jax.experimental import pallas as pl
from jax.experimental.pallas import tpu as pltpu

# ----------------------------- model dims (small, forward-consistent) -----------
INPUT_DIM = 16     # input_dim
HIDDEN = 32        # hidden_layers
NUM_LAYERS = 2     # layer_dim
OUTPUT_DIM = 4     # output_dim
BATCH = 2
SEQ = 8
B_PAD = 8          # pad batch to one full sublane granule
DROPOUT_PROB = 0.1  # unused at inference


# ----------------------------- Pallas kernel ------------------------------------
def make_gru_kernel(num_layers: int, hidden: int, seq_len: int, batch_pad: int):
    """Builds a kernel closed over static layer count / hidden / T / padded B.

    Kernel args (all VMEM refs), in order:
      gi0_ref:  (T, Bp, 3H)  -- layer-0 input projection (+ folded biases), precomputed
      layer 0:  whh0 (H, 3H), bhhn0 (1, H)
      layer l>0: wih_l (H, 3H), bcomb_l (1, 3H), whh_l (H, 3H), bhhn_l (1, H)
      fc_w (H, O), fc_b (1, O)
      out_ref:  (Bp, O)
      scratch:  seq_ref (T, Bp, H), gi_ref (T, Bp, 3H)
    """
    H = hidden
    T = seq_len
    Bp = batch_pad

    def kernel(*args):
        it = iter(args)
        gi0_ref = next(it)
        layer_refs = []
        for l in range(num_layers):
            if l == 0:
                layer_refs.append((None, None, next(it), next(it)))
            else:
                layer_refs.append((next(it), next(it), next(it), next(it)))
        fcw_ref = next(it)
        fcb_ref = next(it)
        out_ref = next(it)
        seq_ref = next(it)
        gi_ref = next(it)

        h_last = jnp.zeros((Bp, H), jnp.float32)
        for l, (wih_ref, bcomb_ref, whh_ref, bhhn_ref) in enumerate(layer_refs):
            is_last = (l == num_layers - 1)

            if l == 0:
                src_gi = gi0_ref
            else:
                # Hoisted input projection for this layer: one matmul over the
                # whole sequence produced by the previous layer.
                seq_flat = seq_ref[...].reshape(T * Bp, H)
                gi_all = (
                    jnp.dot(seq_flat, wih_ref[...],
                            preferred_element_type=jnp.float32)
                    + bcomb_ref[...]
                )
                gi_ref[...] = gi_all.reshape(T, Bp, 3 * H)
                src_gi = gi_ref

            whh = whh_ref[...]                                  # (H, 3H), hoisted
            bhh_n = jnp.broadcast_to(bhhn_ref[...], (Bp, H))    # hoisted broadcast

            def step(t, h, src_gi=src_gi, whh=whh, bhh_n=bhh_n, is_last=is_last):
                gi = src_gi[t]                                  # (Bp, 3H)
                gh = jnp.dot(h, whh, preferred_element_type=jnp.float32)
                # fused sigmoid over r and z (one EUP push, one lane slice)
                rz = jax.nn.sigmoid(gi[:, :2 * H] + gh[:, :2 * H])
                r = rz[:, :H]
                z = rz[:, H:]
                n = jnp.tanh(gi[:, 2 * H:] + r * (gh[:, 2 * H:] + bhh_n))
                h_new = n + z * (h - n)                         # == (1-z)*n + z*h
                if not is_last:
                    seq_ref[t] = h_new
                return h_new

            h_last = lax.fori_loop(0, T, step, jnp.zeros((Bp, H), jnp.float32),
                                   unroll=True)

        # fc on the last timestep of the top layer
        out_ref[...] = (
            jnp.dot(h_last, fcw_ref[...], preferred_element_type=jnp.float32)
            + fcb_ref[...]
        )

    return kernel


# ----------------------------- wrapper -------------------------------------------
@jax.jit
def gru_forward(x, params):
    """x: (B, T, D) batch-first (PyTorch convention).  Returns (B, OUTPUT_DIM)."""
    B, T, D = x.shape
    H = HIDDEN

    # Pad batch to a full sublane granule once, up front.
    x_pad = jnp.zeros((B_PAD, T, D), jnp.float32).at[:B].set(x.astype(jnp.float32))

    layers = params["layers"]

    # Layer-0 input projection in the XLA wrapper (one einsum), with the r/z
    # part of b_hh folded into the bias (the n part must stay inside r*(...)).
    wih0, whh0, bih0, bhh0 = layers[0]
    bcomb0 = bih0.at[: 2 * H].add(bhh0[: 2 * H])                 # (3H,)
    gi0 = jnp.einsum("btd,dg->tbg", x_pad, wih0) + bcomb0        # (T, B_PAD, 3H)

    inputs = [gi0, whh0, bhh0[2 * H:].reshape(1, H)]
    for (wih, whh, bih, bhh) in layers[1:]:
        bcomb = bih.at[: 2 * H].add(bhh[: 2 * H])
        inputs += [wih, bcomb.reshape(1, 3 * H), whh, bhh[2 * H:].reshape(1, H)]
    inputs += [params["fc_w"], params["fc_b"].reshape(1, -1)]

    kernel = make_gru_kernel(NUM_LAYERS, H, T, B_PAD)

    out = pl.pallas_call(
        kernel,
        out_shape=jax.ShapeDtypeStruct((B_PAD, OUTPUT_DIM), jnp.float32),
        in_specs=[pl.BlockSpec(memory_space=pltpu.MemorySpace.VMEM)] * len(inputs),
        out_specs=pl.BlockSpec(memory_space=pltpu.MemorySpace.VMEM),
        scratch_shapes=[
            pltpu.VMEM((T, B_PAD, H), jnp.float32),        # seq_ref (layer outputs)
            pltpu.VMEM((T, B_PAD, 3 * H), jnp.float32),    # gi_ref (hoisted proj.)
        ],
    )(*inputs)
    return out[:B]


# ----------------------------- pure-JAX reference (for validation) ---------------
def gru_reference(x, params):
    B, T, _ = x.shape
    H = HIDDEN
    layer_in = x.astype(jnp.float32)
    h_last = None
    for (wih, whh, bih, bhh) in params["layers"]:
        def cell(h, x_t):
            gi = x_t @ wih + bih
            gh = h @ whh + bhh
            r = jax.nn.sigmoid(gi[:, 0:H] + gh[:, 0:H])
            z = jax.nn.sigmoid(gi[:, H:2 * H] + gh[:, H:2 * H])
            n = jnp.tanh(gi[:, 2 * H:3 * H] + r * gh[:, 2 * H:3 * H])
            h_new = (1.0 - z) * n + z * h
            return h_new, h_new

        x_tm = jnp.swapaxes(layer_in, 0, 1)                      # (T, B, D_l)
        h_last, ys = lax.scan(cell, jnp.zeros((B, H), jnp.float32), x_tm)
        layer_in = jnp.swapaxes(ys, 0, 1)                        # (B, T, H)
    return h_last @ params["fc_w"] + params["fc_b"]


# ----------------------------- deterministic params ------------------------------
def init_params(key):
    """PyTorch-style init: U(-1/sqrt(H), 1/sqrt(H)). Weights stored pre-transposed."""
    scale = 1.0 / jnp.sqrt(jnp.float32(HIDDEN))
    layers = []
    for layer in range(NUM_LAYERS):
        d_in = INPUT_DIM if layer == 0 else HIDDEN
        key, k1, k2, k3, k4 = jax.random.split(key, 5)
        wih = jax.random.uniform(k1, (d_in, 3 * HIDDEN), jnp.float32, -scale, scale)
        whh = jax.random.uniform(k2, (HIDDEN, 3 * HIDDEN), jnp.float32, -scale, scale)
        bih = jax.random.uniform(k3, (3 * HIDDEN,), jnp.float32, -scale, scale)
        bhh = jax.random.uniform(k4, (3 * HIDDEN,), jnp.float32, -scale, scale)
        layers.append((wih, whh, bih, bhh))
    key, k5, k6 = jax.random.split(key, 3)
    fc_scale = 1.0 / jnp.sqrt(jnp.float32(HIDDEN))
    fc_w = jax.random.uniform(k5, (HIDDEN, OUTPUT_DIM), jnp.float32, -fc_scale, fc_scale)
    fc_b = jax.random.uniform(k6, (OUTPUT_DIM,), jnp.float32, -fc_scale, fc_scale)
    return {"layers": layers, "fc_w": fc_w, "fc_b": fc_b}


# ----------------------------- main -----------------------------------------------
if __name__ == "__main__":
    root = jax.random.PRNGKey(0)
    kx, kp = jax.random.split(root)

    x = jax.random.normal(kx, (BATCH, SEQ, INPUT_DIM), jnp.float32)
    params = init_params(kp)

    out = gru_forward(x, params)
    out = jax.block_until_ready(out)

    ref = gru_reference(x, params)
    assert out.shape == (BATCH, OUTPUT_DIM)
    assert jnp.allclose(out, ref, atol=1e-4, rtol=1e-4), (
        f"mismatch: max abs err = {jnp.max(jnp.abs(out - ref))}"
    )
    print("KERNEL_OK")
</pallas_src>

<mosaic_0001>
module attributes {stable_mosaic.version = 11 : i64} {
  func.func @kernel(%arg0: memref<8x8x96xf32, #tpu.memory_space<vmem>>, %arg1: memref<32x96xf32, #tpu.memory_space<vmem>>, %arg2: memref<1x32xf32, #tpu.memory_space<vmem>>, %arg3: memref<32x96xf32, #tpu.memory_space<vmem>>, %arg4: memref<1x96xf32, #tpu.memory_space<vmem>>, %arg5: memref<32x96xf32, #tpu.memory_space<vmem>>, %arg6: memref<1x32xf32, #tpu.memory_space<vmem>>, %arg7: memref<32x4xf32, #tpu.memory_space<vmem>>, %arg8: memref<1x4xf32, #tpu.memory_space<vmem>>, %arg9: memref<8x4xf32, #tpu.memory_space<vmem>>, %arg10: memref<8x8x32xf32, #tpu.memory_space<vmem>>, %arg11: memref<8x8x96xf32, #tpu.memory_space<vmem>>) attributes {dimension_semantics = [], scalar_prefetch = 0 : i64, scratch_operands = 2 : i64, tpu.core_type = #tpu.core_type<tc>} {
    %c0 = arith.constant 0 : index
    %c0_0 = arith.constant 0 : index
    %0 = vector.load %arg1[%c0, %c0_0] : memref<32x96xf32, #tpu.memory_space<vmem>>, vector<32x96xf32>
    %c0_1 = arith.constant 0 : index
    %c0_2 = arith.constant 0 : index
    %1 = vector.load %arg2[%c0_1, %c0_2] : memref<1x32xf32, #tpu.memory_space<vmem>>, vector<1x32xf32>
    %2 = vector.shape_cast %1 : vector<1x32xf32> to vector<1x32xf32>
    %3 = vector.broadcast %2 : vector<1x32xf32> to vector<8x32xf32>
    %cst = arith.constant 0.000000e+00 : f32
    %4 = vector.broadcast %cst : f32 to vector<8x32xf32>
    %c0_i32 = arith.constant 0 : i32
    %5 = arith.index_cast %c0_i32 : i32 to index
    %c0_3 = arith.constant 0 : index
    %c0_4 = arith.constant 0 : index
    %6 = vector.load %arg0[%5, %c0_3, %c0_4] : memref<8x8x96xf32, #tpu.memory_space<vmem>>, vector<1x8x96xf32>
    %7 = vector.shape_cast %6 : vector<1x8x96xf32> to vector<8x96xf32>
    %cst_5 = arith.constant dense<0.000000e+00> : vector<8x96xf32>
    %8 = tpu.matmul %4, %0, %cst_5 {dimension_numbers = #tpu.dot_dimension_numbers<[1], [0], [0], [1], [0, 0, 1, 1], [], []>} : vector<8x32xf32>, vector<32x96xf32>, vector<8x96xf32> -> vector<8x96xf32>
    %9 = vector.extract_strided_slice %7 {offsets = [0, 0], sizes = [8, 64], strides = [1, 1]} : vector<8x96xf32> to vector<8x64xf32>
    %10 = vector.extract_strided_slice %8 {offsets = [0, 0], sizes = [8, 64], strides = [1, 1]} : vector<8x96xf32> to vector<8x64xf32>
    %11 = arith.addf %9, %10 : vector<8x64xf32>
    %12 = arith.negf %11 : vector<8x64xf32>
    %13 = math.exp %12 : vector<8x64xf32>
    %cst_6 = arith.constant 1.000000e+00 : f32
    %14 = vector.broadcast %cst_6 : f32 to vector<8x64xf32>
    %15 = arith.addf %14, %13 : vector<8x64xf32>
    %16 = arith.divf %14, %15 : vector<8x64xf32>
    %17 = vector.extract_strided_slice %16 {offsets = [0, 0], sizes = [8, 32], strides = [1, 1]} : vector<8x64xf32> to vector<8x32xf32>
    %18 = vector.extract_strided_slice %16 {offsets = [0, 32], sizes = [8, 32], strides = [1, 1]} : vector<8x64xf32> to vector<8x32xf32>
    %19 = vector.extract_strided_slice %7 {offsets = [0, 64], sizes = [8, 32], strides = [1, 1]} : vector<8x96xf32> to vector<8x32xf32>
    %20 = vector.extract_strided_slice %8 {offsets = [0, 64], sizes = [8, 32], strides = [1, 1]} : vector<8x96xf32> to vector<8x32xf32>
    %21 = arith.addf %20, %3 : vector<8x32xf32>
    %22 = arith.mulf %17, %21 : vector<8x32xf32>
    %23 = arith.addf %19, %22 : vector<8x32xf32>
    %24 = math.tanh %23 : vector<8x32xf32>
    %25 = arith.subf %4, %24 : vector<8x32xf32>
    %26 = arith.mulf %18, %25 : vector<8x32xf32>
    %27 = arith.addf %24, %26 : vector<8x32xf32>
    %28 = arith.index_cast %c0_i32 : i32 to index
    %c0_7 = arith.constant 0 : index
    %c0_8 = arith.constant 0 : index
    %29 = vector.load %arg10[%28, %c0_7, %c0_8] : memref<8x8x32xf32, #tpu.memory_space<vmem>>, vector<1x8x32xf32>
    %30 = vector.shape_cast %29 : vector<1x8x32xf32> to vector<8x32xf32>
    %31 = vector.shape_cast %27 : vector<8x32xf32> to vector<1x8x32xf32>
    tpu.vector_store %arg10[%28, %c0_7, %c0_8], %31 {strides = array<i32>} : memref<8x8x32xf32, #tpu.memory_space<vmem>>, vector<1x8x32xf32>,
    %c1_i32 = arith.constant 1 : i32
    %32 = arith.index_cast %c1_i32 : i32 to index
    %c0_9 = arith.constant 0 : index
    %c0_10 = arith.constant 0 : index
    %33 = vector.load %arg0[%32, %c0_9, %c0_10] : memref<8x8x96xf32, #tpu.memory_space<vmem>>, vector<1x8x96xf32>
    %34 = vector.shape_cast %33 : vector<1x8x96xf32> to vector<8x96xf32>
    %cst_11 = arith.constant dense<0.000000e+00> : vector<8x96xf32>
    %35 = tpu.matmul %27, %0, %cst_11 {dimension_numbers = #tpu.dot_dimension_numbers<[1], [0], [0], [1], [0, 0, 1, 1], [], []>} : vector<8x32xf32>, vector<32x96xf32>, vector<8x96xf32> -> vector<8x96xf32>
    %36 = vector.extract_strided_slice %34 {offsets = [0, 0], sizes = [8, 64], strides = [1, 1]} : vector<8x96xf32> to vector<8x64xf32>
    %37 = vector.extract_strided_slice %35 {offsets = [0, 0], sizes = [8, 64], strides = [1, 1]} : vector<8x96xf32> to vector<8x64xf32>
    %38 = arith.addf %36, %37 : vector<8x64xf32>
    %39 = arith.negf %38 : vector<8x64xf32>
    %40 = math.exp %39 : vector<8x64xf32>
    %cst_12 = arith.constant 1.000000e+00 : f32
    %41 = vector.broadcast %cst_12 : f32 to vector<8x64xf32>
    %42 = arith.addf %41, %40 : vector<8x64xf32>
    %43 = arith.divf %41, %42 : vector<8x64xf32>
    %44 = vector.extract_strided_slice %43 {offsets = [0, 0], sizes = [8, 32], strides = [1, 1]} : vector<8x64xf32> to vector<8x32xf32>
    %45 = vector.extract_strided_slice %43 {offsets = [0, 32], sizes = [8, 32], strides = [1, 1]} : vector<8x64xf32> to vector<8x32xf32>
    %46 = vector.extract_strided_slice %34 {offsets = [0, 64], sizes = [8, 32], strides = [1, 1]} : vector<8x96xf32> to vector<8x32xf32>
    %47 = vector.extract_strided_slice %35 {offsets = [0, 64], sizes = [8, 32], strides = [1, 1]} : vector<8x96xf32> to vector<8x32xf32>
    %48 = arith.addf %47, %3 : vector<8x32xf32>
    %49 = arith.mulf %44, %48 : vector<8x32xf32>
    %50 = arith.addf %46, %49 : vector<8x32xf32>
    %51 = math.tanh %50 : vector<8x32xf32>
    %52 = arith.subf %27, %51 : vector<8x32xf32>
    %53 = arith.mulf %45, %52 : vector<8x32xf32>
    %54 = arith.addf %51, %53 : vector<8x32xf32>
    %55 = arith.index_cast %c1_i32 : i32 to index
    %c0_13 = arith.constant 0 : index
    %c0_14 = arith.constant 0 : index
    %56 = vector.load %arg10[%55, %c0_13, %c0_14] : memref<8x8x32xf32, #tpu.memory_space<vmem>>, vector<1x8x32xf32>
    %57 = vector.shape_cast %56 : vector<1x8x32xf32> to vector<8x32xf32>
    %58 = vector.shape_cast %54 : vector<8x32xf32> to vector<1x8x32xf32>
    tpu.vector_store %arg10[%55, %c0_13, %c0_14], %58 {strides = array<i32>} : memref<8x8x32xf32, #tpu.memory_space<vmem>>, vector<1x8x32xf32>,
    %c2_i32 = arith.constant 2 : i32
    %59 = arith.index_cast %c2_i32 : i32 to index
    %c0_15 = arith.constant 0 : index
    %c0_16 = arith.constant 0 : index
    %60 = vector.load %arg0[%59, %c0_15, %c0_16] : memref<8x8x96xf32, #tpu.memory_space<vmem>>, vector<1x8x96xf32>
    %61 = vector.shape_cast %60 : vector<1x8x96xf32> to vector<8x96xf32>
    %cst_17 = arith.constant dense<0.000000e+00> : vector<8x96xf32>
    %62 = tpu.matmul %54, %0, %cst_17 {dimension_numbers = #tpu.dot_dimension_numbers<[1], [0], [0], [1], [0, 0, 1, 1], [], []>} : vector<8x32xf32>, vector<32x96xf32>, vector<8x96xf32> -> vector<8x96xf32>
    %63 = vector.extract_strided_slice %61 {offsets = [0, 0], sizes = [8, 64], strides = [1, 1]} : vector<8x96xf32> to vector<8x64xf32>
    %64 = vector.extract_strided_slice %62 {offsets = [0, 0], sizes = [8, 64], strides = [1, 1]} : vector<8x96xf32> to vector<8x64xf32>
    %65 = arith.addf %63, %64 : vector<8x64xf32>
    %66 = arith.negf %65 : vector<8x64xf32>
    %67 = math.exp %66 : vector<8x64xf32>
    %cst_18 = arith.constant 1.000000e+00 : f32
    %68 = vector.broadcast %cst_18 : f32 to vector<8x64xf32>
    %69 = arith.addf %68, %67 : vector<8x64xf32>
    %70 = arith.divf %68, %69 : vector<8x64xf32>
    %71 = vector.extract_strided_slice %70 {offsets = [0, 0], sizes = [8, 32], strides = [1, 1]} : vector<8x64xf32> to vector<8x32xf32>
    %72 = vector.extract_strided_slice %70 {offsets = [0, 32], sizes = [8, 32], strides = [1, 1]} : vector<8x64xf32> to vector<8x32xf32>
    %73 = vector.extract_strided_slice %61 {offsets = [0, 64], sizes = [8, 32], strides = [1, 1]} : vector<8x96xf32> to vector<8x32xf32>
    %74 = vector.extract_strided_slice %62 {offsets = [0, 64], sizes = [8, 32], strides = [1, 1]} : vector<8x96xf32> to vector<8x32xf32>
    %75 = arith.addf %74, %3 : vector<8x32xf32>
    %76 = arith.mulf %71, %75 : vector<8x32xf32>
    %77 = arith.addf %73, %76 : vector<8x32xf32>
    %78 = math.tanh %77 : vector<8x32xf32>
    %79 = arith.subf %54, %78 : vector<8x32xf32>
    %80 = arith.mulf %72, %79 : vector<8x32xf32>
    %81 = arith.addf %78, %80 : vector<8x32xf32>
    %82 = arith.index_cast %c2_i32 : i32 to index
    %c0_19 = arith.constant 0 : index
    %c0_20 = arith.constant 0 : index
    %83 = vector.load %arg10[%82, %c0_19, %c0_20] : memref<8x8x32xf32, #tpu.memory_space<vmem>>, vector<1x8x32xf32>
    %84 = vector.shape_cast %83 : vector<1x8x32xf32> to vector<8x32xf32>
    %85 = vector.shape_cast %81 : vector<8x32xf32> to vector<1x8x32xf32>
    tpu.vector_store %arg10[%82, %c0_19, %c0_20], %85 {strides = array<i32>} : memref<8x8x32xf32, #tpu.memory_space<vmem>>, vector<1x8x32xf32>,
    %c3_i32 = arith.constant 3 : i32
    %86 = arith.index_cast %c3_i32 : i32 to index
    %c0_21 = arith.constant 0 : index
    %c0_22 = arith.constant 0 : index
    %87 = vector.load %arg0[%86, %c0_21, %c0_22] : memref<8x8x96xf32, #tpu.memory_space<vmem>>, vector<1x8x96xf32>
    %88 = vector.shape_cast %87 : vector<1x8x96xf32> to vector<8x96xf32>
    %cst_23 = arith.constant dense<0.000000e+00> : vector<8x96xf32>
    %89 = tpu.matmul %81, %0, %cst_23 {dimension_numbers = #tpu.dot_dimension_numbers<[1], [0], [0], [1], [0, 0, 1, 1], [], []>} : vector<8x32xf32>, vector<32x96xf32>, vector<8x96xf32> -> vector<8x96xf32>
    %90 = vector.extract_strided_slice %88 {offsets = [0, 0], sizes = [8, 64], strides = [1, 1]} : vector<8x96xf32> to vector<8x64xf32>
    %91 = vector.extract_strided_slice %89 {offsets = [0, 0], sizes = [8, 64], strides = [1, 1]} : vector<8x96xf32> to vector<8x64xf32>
    %92 = arith.addf %90, %91 : vector<8x64xf32>
    %93 = arith.negf %92 : vector<8x64xf32>
    %94 = math.exp %93 : vector<8x64xf32>
    %cst_24 = arith.constant 1.000000e+00 : f32
    %95 = vector.broadcast %cst_24 : f32 to vector<8x64xf32>
    %96 = arith.addf %95, %94 : vector<8x64xf32>
    %97 = arith.divf %95, %96 : vector<8x64xf32>
    %98 = vector.extract_strided_slice %97 {offsets = [0, 0], sizes = [8, 32], strides = [1, 1]} : vector<8x64xf32> to vector<8x32xf32>
    %99 = vector.extract_strided_slice %97 {offsets = [0, 32], sizes = [8, 32], strides = [1, 1]} : vector<8x64xf32> to vector<8x32xf32>
    %100 = vector.extract_strided_slice %88 {offsets = [0, 64], sizes = [8, 32], strides = [1, 1]} : vector<8x96xf32> to vector<8x32xf32>
    %101 = vector.extract_strided_slice %89 {offsets = [0, 64], sizes = [8, 32], strides = [1, 1]} : vector<8x96xf32> to vector<8x32xf32>
    %102 = arith.addf %101, %3 : vector<8x32xf32>
    %103 = arith.mulf %98, %102 : vector<8x32xf32>
    %104 = arith.addf %100, %103 : vector<8x32xf32>
    %105 = math.tanh %104 : vector<8x32xf32>
    %106 = arith.subf %81, %105 : vector<8x32xf32>
    %107 = arith.mulf %99, %106 : vector<8x32xf32>
    %108 = arith.addf %105, %107 : vector<8x32xf32>
    %109 = arith.index_cast %c3_i32 : i32 to index
    %c0_25 = arith.constant 0 : index
    %c0_26 = arith.constant 0 : index
    %110 = vector.load %arg10[%109, %c0_25, %c0_26] : memref<8x8x32xf32, #tpu.memory_space<vmem>>, vector<1x8x32xf32>
    %111 = vector.shape_cast %110 : vector<1x8x32xf32> to vector<8x32xf32>
    %112 = vector.shape_cast %108 : vector<8x32xf32> to vector<1x8x32xf32>
    tpu.vector_store %arg10[%109, %c0_25, %c0_26], %112 {strides = array<i32>} : memref<8x8x32xf32, #tpu.memory_space<vmem>>, vector<1x8x32xf32>,
    %c4_i32 = arith.constant 4 : i32
    %113 = arith.index_cast %c4_i32 : i32 to index
    %c0_27 = arith.constant 0 : index
    %c0_28 = arith.constant 0 : index
    %114 = vector.load %arg0[%113, %c0_27, %c0_28] : memref<8x8x96xf32, #tpu.memory_space<vmem>>, vector<1x8x96xf32>
    %115 = vector.shape_cast %114 : vector<1x8x96xf32> to vector<8x96xf32>
    %cst_29 = arith.constant dense<0.000000e+00> : vector<8x96xf32>
    %116 = tpu.matmul %108, %0, %cst_29 {dimension_numbers = #tpu.dot_dimension_numbers<[1], [0], [0], [1], [0, 0, 1, 1], [], []>} : vector<8x32xf32>, vector<32x96xf32>, vector<8x96xf32> -> vector<8x96xf32>
    %117 = vector.extract_strided_slice %115 {offsets = [0, 0], sizes = [8, 64], strides = [1, 1]} : vector<8x96xf32> to vector<8x64xf32>
    %118 = vector.extract_strided_slice %116 {offsets = [0, 0], sizes = [8, 64], strides = [1, 1]} : vector<8x96xf32> to vector<8x64xf32>
    %119 = arith.addf %117, %118 : vector<8x64xf32>
    %120 = arith.negf %119 : vector<8x64xf32>
    %121 = math.exp %120 : vector<8x64xf32>
    %cst_30 = arith.constant 1.000000e+00 : f32
    %122 = vector.broadcast %cst_30 : f32 to vector<8x64xf32>
    %123 = arith.addf %122, %121 : vector<8x64xf32>
    %124 = arith.divf %122, %123 : vector<8x64xf32>
    %125 = vector.extract_strided_slice %124 {offsets = [0, 0], sizes = [8, 32], strides = [1, 1]} : vector<8x64xf32> to vector<8x32xf32>
    %126 = vector.extract_strided_slice %124 {offsets = [0, 32], sizes = [8, 32], strides = [1, 1]} : vector<8x64xf32> to vector<8x32xf32>
    %127 = vector.extract_strided_slice %115 {offsets = [0, 64], sizes = [8, 32], strides = [1, 1]} : vector<8x96xf32> to vector<8x32xf32>
    %128 = vector.extract_strided_slice %116 {offsets = [0, 64], sizes = [8, 32], strides = [1, 1]} : vector<8x96xf32> to vector<8x32xf32>
    %129 = arith.addf %128, %3 : vector<8x32xf32>
    %130 = arith.mulf %125, %129 : vector<8x32xf32>
    %131 = arith.addf %127, %130 : vector<8x32xf32>
    %132 = math.tanh %131 : vector<8x32xf32>
    %133 = arith.subf %108, %132 : vector<8x32xf32>
    %134 = arith.mulf %126, %133 : vector<8x32xf32>
    %135 = arith.addf %132, %134 : vector<8x32xf32>
    %136 = arith.index_cast %c4_i32 : i32 to index
    %c0_31 = arith.constant 0 : index
    %c0_32 = arith.constant 0 : index
    %137 = vector.load %arg10[%136, %c0_31, %c0_32] : memref<8x8x32xf32, #tpu.memory_space<vmem>>, vector<1x8x32xf32>
    %138 = vector.shape_cast %137 : vector<1x8x32xf32> to vector<8x32xf32>
    %139 = vector.shape_cast %135 : vector<8x32xf32> to vector<1x8x32xf32>
    tpu.vector_store %arg10[%136, %c0_31, %c0_32], %139 {strides = array<i32>} : memref<8x8x32xf32, #tpu.memory_space<vmem>>, vector<1x8x32xf32>,
    %c5_i32 = arith.constant 5 : i32
    %140 = arith.index_cast %c5_i32 : i32 to index
    %c0_33 = arith.constant 0 : index
    %c0_34 = arith.constant 0 : index
    %141 = vector.load %arg0[%140, %c0_33, %c0_34] : memref<8x8x96xf32, #tpu.memory_space<vmem>>, vector<1x8x96xf32>
    %142 = vector.shape_cast %141 : vector<1x8x96xf32> to vector<8x96xf32>
    %cst_35 = arith.constant dense<0.000000e+00> : vector<8x96xf32>
    %143 = tpu.matmul %135, %0, %cst_35 {dimension_numbers = #tpu.dot_dimension_numbers<[1], [0], [0], [1], [0, 0, 1, 1], [], []>} : vector<8x32xf32>, vector<32x96xf32>, vector<8x96xf32> -> vector<8x96xf32>
    %144 = vector.extract_strided_slice %142 {offsets = [0, 0], sizes = [8, 64], strides = [1, 1]} : vector<8x96xf32> to vector<8x64xf32>
    %145 = vector.extract_strided_slice %143 {offsets = [0, 0], sizes = [8, 64], strides = [1, 1]} : vector<8x96xf32> to vector<8x64xf32>
    %146 = arith.addf %144, %145 : vector<8x64xf32>
    %147 = arith.negf %146 : vector<8x64xf32>
    %148 = math.exp %147 : vector<8x64xf32>
    %cst_36 = arith.constant 1.000000e+00 : f32
    %149 = vector.broadcast %cst_36 : f32 to vector<8x64xf32>
    %150 = arith.addf %149, %148 : vector<8x64xf32>
    %151 = arith.divf %149, %150 : vector<8x64xf32>
    %152 = vector.extract_strided_slice %151 {offsets = [0, 0], sizes = [8, 32], strides = [1, 1]} : vector<8x64xf32> to vector<8x32xf32>
    %153 = vector.extract_strided_slice %151 {offsets = [0, 32], sizes = [8, 32], strides = [1, 1]} : vector<8x64xf32> to vector<8x32xf32>
    %154 = vector.extract_strided_slice %142 {offsets = [0, 64], sizes = [8, 32], strides = [1, 1]} : vector<8x96xf32> to vector<8x32xf32>
    %155 = vector.extract_strided_slice %143 {offsets = [0, 64], sizes = [8, 32], strides = [1, 1]} : vector<8x96xf32> to vector<8x32xf32>
    %156 = arith.addf %155, %3 : vector<8x32xf32>
    %157 = arith.mulf %152, %156 : vector<8x32xf32>
    %158 = arith.addf %154, %157 : vector<8x32xf32>
    %159 = math.tanh %158 : vector<8x32xf32>
    %160 = arith.subf %135, %159 : vector<8x32xf32>
    %161 = arith.mulf %153, %160 : vector<8x32xf32>
    %162 = arith.addf %159, %161 : vector<8x32xf32>
    %163 = arith.index_cast %c5_i32 : i32 to index
    %c0_37 = arith.constant 0 : index
    %c0_38 = arith.constant 0 : index
    %164 = vector.load %arg10[%163, %c0_37, %c0_38] : memref<8x8x32xf32, #tpu.memory_space<vmem>>, vector<1x8x32xf32>
    %165 = vector.shape_cast %164 : vector<1x8x32xf32> to vector<8x32xf32>
    %166 = vector.shape_cast %162 : vector<8x32xf32> to vector<1x8x32xf32>
    tpu.vector_store %arg10[%163, %c0_37, %c0_38], %166 {strides = array<i32>} : memref<8x8x32xf32, #tpu.memory_space<vmem>>, vector<1x8x32xf32>,
    %c6_i32 = arith.constant 6 : i32
    %167 = arith.index_cast %c6_i32 : i32 to index
    %c0_39 = arith.constant 0 : index
    %c0_40 = arith.constant 0 : index
    %168 = vector.load %arg0[%167, %c0_39, %c0_40] : memref<8x8x96xf32, #tpu.memory_space<vmem>>, vector<1x8x96xf32>
    %169 = vector.shape_cast %168 : vector<1x8x96xf32> to vector<8x96xf32>
    %cst_41 = arith.constant dense<0.000000e+00> : vector<8x96xf32>
    %170 = tpu.matmul %162, %0, %cst_41 {dimension_numbers = #tpu.dot_dimension_numbers<[1], [0], [0], [1], [0, 0, 1, 1], [], []>} : vector<8x32xf32>, vector<32x96xf32>, vector<8x96xf32> -> vector<8x96xf32>
    %171 = vector.extract_strided_slice %169 {offsets = [0, 0], sizes = [8, 64], strides = [1, 1]} : vector<8x96xf32> to vector<8x64xf32>
    %172 = vector.extract_strided_slice %170 {offsets = [0, 0], sizes = [8, 64], strides = [1, 1]} : vector<8x96xf32> to vector<8x64xf32>
    %173 = arith.addf %171, %172 : vector<8x64xf32>
    %174 = arith.negf %173 : vector<8x64xf32>
    %175 = math.exp %174 : vector<8x64xf32>
    %cst_42 = arith.constant 1.000000e+00 : f32
    %176 = vector.broadcast %cst_42 : f32 to vector<8x64xf32>
    %177 = arith.addf %176, %175 : vector<8x64xf32>
    %178 = arith.divf %176, %177 : vector<8x64xf32>
    %179 = vector.extract_strided_slice %178 {offsets = [0, 0], sizes = [8, 32], strides = [1, 1]} : vector<8x64xf32> to vector<8x32xf32>
    %180 = vector.extract_strided_slice %178 {offsets = [0, 32], sizes = [8, 32], strides = [1, 1]} : vector<8x64xf32> to vector<8x32xf32>
    %181 = vector.extract_strided_slice %169 {offsets = [0, 64], sizes = [8, 32], strides = [1, 1]} : vector<8x96xf32> to vector<8x32xf32>
    %182 = vector.extract_strided_slice %170 {offsets = [0, 64], sizes = [8, 32], strides = [1, 1]} : vector<8x96xf32> to vector<8x32xf32>
    %183 = arith.addf %182, %3 : vector<8x32xf32>
    %184 = arith.mulf %179, %183 : vector<8x32xf32>
    %185 = arith.addf %181, %184 : vector<8x32xf32>
    %186 = math.tanh %185 : vector<8x32xf32>
    %187 = arith.subf %162, %186 : vector<8x32xf32>
    %188 = arith.mulf %180, %187 : vector<8x32xf32>
    %189 = arith.addf %186, %188 : vector<8x32xf32>
    %190 = arith.index_cast %c6_i32 : i32 to index
    %c0_43 = arith.constant 0 : index
    %c0_44 = arith.constant 0 : index
    %191 = vector.load %arg10[%190, %c0_43, %c0_44] : memref<8x8x32xf32, #tpu.memory_space<vmem>>, vector<1x8x32xf32>
    %192 = vector.shape_cast %191 : vector<1x8x32xf32> to vector<8x32xf32>
    %193 = vector.shape_cast %189 : vector<8x32xf32> to vector<1x8x32xf32>
    tpu.vector_store %arg10[%190, %c0_43, %c0_44], %193 {strides = array<i32>} : memref<8x8x32xf32, #tpu.memory_space<vmem>>, vector<1x8x32xf32>,
    %c7_i32 = arith.constant 7 : i32
    %194 = arith.index_cast %c7_i32 : i32 to index
    %c0_45 = arith.constant 0 : index
    %c0_46 = arith.constant 0 : index
    %195 = vector.load %arg0[%194, %c0_45, %c0_46] : memref<8x8x96xf32, #tpu.memory_space<vmem>>, vector<1x8x96xf32>
    %196 = vector.shape_cast %195 : vector<1x8x96xf32> to vector<8x96xf32>
    %cst_47 = arith.constant dense<0.000000e+00> : vector<8x96xf32>
    %197 = tpu.matmul %189, %0, %cst_47 {dimension_numbers = #tpu.dot_dimension_numbers<[1], [0], [0], [1], [0, 0, 1, 1], [], []>} : vector<8x32xf32>, vector<32x96xf32>, vector<8x96xf32> -> vector<8x96xf32>
    %198 = vector.extract_strided_slice %196 {offsets = [0, 0], sizes = [8, 64], strides = [1, 1]} : vector<8x96xf32> to vector<8x64xf32>
    %199 = vector.extract_strided_slice %197 {offsets = [0, 0], sizes = [8, 64], strides = [1, 1]} : vector<8x96xf32> to vector<8x64xf32>
    %200 = arith.addf %198, %199 : vector<8x64xf32>
    %201 = arith.negf %200 : vector<8x64xf32>
    %202 = math.exp %201 : vector<8x64xf32>
    %cst_48 = arith.constant 1.000000e+00 : f32
    %203 = vector.broadcast %cst_48 : f32 to vector<8x64xf32>
    %204 = arith.addf %203, %202 : vector<8x64xf32>
    %205 = arith.divf %203, %204 : vector<8x64xf32>
    %206 = vector.extract_strided_slice %205 {offsets = [0, 0], sizes = [8, 32], strides = [1, 1]} : vector<8x64xf32> to vector<8x32xf32>
    %207 = vector.extract_strided_slice %205 {offsets = [0, 32], sizes = [8, 32], strides = [1, 1]} : vector<8x64xf32> to vector<8x32xf32>
    %208 = vector.extract_strided_slice %196 {offsets = [0, 64], sizes = [8, 32], strides = [1, 1]} : vector<8x96xf32> to vector<8x32xf32>
    %209 = vector.extract_strided_slice %197 {offsets = [0, 64], sizes = [8, 32], strides = [1, 1]} : vector<8x96xf32> to vector<8x32xf32>
    %210 = arith.addf %209, %3 : vector<8x32xf32>
    %211 = arith.mulf %206, %210 : vector<8x32xf32>
    %212 = arith.addf %208, %211 : vector<8x32xf32>
    %213 = math.tanh %212 : vector<8x32xf32>
    %214 = arith.subf %189, %213 : vector<8x32xf32>
    %215 = arith.mulf %207, %214 : vector<8x32xf32>
    %216 = arith.addf %213, %215 : vector<8x32xf32>
    %217 = arith.index_cast %c7_i32 : i32 to index
    %c0_49 = arith.constant 0 : index
    %c0_50 = arith.constant 0 : index
    %218 = vector.load %arg10[%217, %c0_49, %c0_50] : memref<8x8x32xf32, #tpu.memory_space<vmem>>, vector<1x8x32xf32>
    %219 = vector.shape_cast %218 : vector<1x8x32xf32> to vector<8x32xf32>
    %220 = vector.shape_cast %216 : vector<8x32xf32> to vector<1x8x32xf32>
    tpu.vector_store %arg10[%217, %c0_49, %c0_50], %220 {strides = array<i32>} : memref<8x8x32xf32, #tpu.memory_space<vmem>>, vector<1x8x32xf32>,
    %c8_i32 = arith.constant 8 : i32
    %c0_51 = arith.constant 0 : index
    %c0_52 = arith.constant 0 : index
    %c0_53 = arith.constant 0 : index
    %221 = vector.load %arg10[%c0_51, %c0_52, %c0_53] : memref<8x8x32xf32, #tpu.memory_space<vmem>>, vector<8x8x32xf32>
    %222 = vector.shape_cast %221 : vector<8x8x32xf32> to vector<64x32xf32>
    %c0_54 = arith.constant 0 : index
    %c0_55 = arith.constant 0 : index
    %223 = vector.load %arg3[%c0_54, %c0_55] : memref<32x96xf32, #tpu.memory_space<vmem>>, vector<32x96xf32>
    %cst_56 = arith.constant dense<0.000000e+00> : vector<64x96xf32>
    %224 = tpu.matmul %222, %223, %cst_56 {dimension_numbers = #tpu.dot_dimension_numbers<[1], [0], [0], [1], [0, 0, 1, 1], [], []>} : vector<64x32xf32>, vector<32x96xf32>, vector<64x96xf32> -> vector<64x96xf32>
    %c0_57 = arith.constant 0 : index
    %c0_58 = arith.constant 0 : index
    %225 = vector.load %arg4[%c0_57, %c0_58] : memref<1x96xf32, #tpu.memory_space<vmem>>, vector<1x96xf32>
    %226 = vector.broadcast %225 : vector<1x96xf32> to vector<64x96xf32>
    %227 = arith.addf %224, %226 : vector<64x96xf32>
    %228 = vector.shape_cast %227 : vector<64x96xf32> to vector<8x8x96xf32>
    %c0_59 = arith.constant 0 : index
    %c0_60 = arith.constant 0 : index
    %c0_61 = arith.constant 0 : index
    %229 = vector.load %arg11[%c0_59, %c0_60, %c0_61] : memref<8x8x96xf32, #tpu.memory_space<vmem>>, vector<8x8x96xf32>
    tpu.vector_store %arg11[%c0_59, %c0_60, %c0_61], %228 {strides = array<i32>} : memref<8x8x96xf32, #tpu.memory_space<vmem>>, vector<8x8x96xf32>,
    %c0_62 = arith.constant 0 : index
    %c0_63 = arith.constant 0 : index
    %230 = vector.load %arg5[%c0_62, %c0_63] : memref<32x96xf32, #tpu.memory_space<vmem>>, vector<32x96xf32>
    %c0_64 = arith.constant 0 : index
    %c0_65 = arith.constant 0 : index
    %231 = vector.load %arg6[%c0_64, %c0_65] : memref<1x32xf32, #tpu.memory_space<vmem>>, vector<1x32xf32>
    %232 = vector.shape_cast %231 : vector<1x32xf32> to vector<1x32xf32>
    %233 = vector.broadcast %232 : vector<1x32xf32> to vector<8x32xf32>
    %cst_66 = arith.constant 0.000000e+00 : f32
    %234 = vector.broadcast %cst_66 : f32 to vector<8x32xf32>
    %c0_i32_67 = arith.constant 0 : i32
    %235 = arith.index_cast %c0_i32_67 : i32 to index
    %c0_68 = arith.constant 0 : index
    %c0_69 = arith.constant 0 : index
    %236 = vector.load %arg11[%235, %c0_68, %c0_69] : memref<8x8x96xf32, #tpu.memory_space<vmem>>, vector<1x8x96xf32>
    %237 = vector.shape_cast %236 : vector<1x8x96xf32> to vector<8x96xf32>
    %cst_70 = arith.constant dense<0.000000e+00> : vector<8x96xf32>
    %238 = tpu.matmul %234, %230, %cst_70 {dimension_numbers = #tpu.dot_dimension_numbers<[1], [0], [0], [1], [0, 0, 1, 1], [], []>} : vector<8x32xf32>, vector<32x96xf32>, vector<8x96xf32> -> vector<8x96xf32>
    %239 = vector.extract_strided_slice %237 {offsets = [0, 0], sizes = [8, 64], strides = [1, 1]} : vector<8x96xf32> to vector<8x64xf32>
    %240 = vector.extract_strided_slice %238 {offsets = [0, 0], sizes = [8, 64], strides = [1, 1]} : vector<8x96xf32> to vector<8x64xf32>
    %241 = arith.addf %239, %240 : vector<8x64xf32>
    %242 = arith.negf %241 : vector<8x64xf32>
    %243 = math.exp %242 : vector<8x64xf32>
    %cst_71 = arith.constant 1.000000e+00 : f32
    %244 = vector.broadcast %cst_71 : f32 to vector<8x64xf32>
    %245 = arith.addf %244, %243 : vector<8x64xf32>
    %246 = arith.divf %244, %245 : vector<8x64xf32>
    %247 = vector.extract_strided_slice %246 {offsets = [0, 0], sizes = [8, 32], strides = [1, 1]} : vector<8x64xf32> to vector<8x32xf32>
    %248 = vector.extract_strided_slice %246 {offsets = [0, 32], sizes = [8, 32], strides = [1, 1]} : vector<8x64xf32> to vector<8x32xf32>
    %249 = vector.extract_strided_slice %237 {offsets = [0, 64], sizes = [8, 32], strides = [1, 1]} : vector<8x96xf32> to vector<8x32xf32>
    %250 = vector.extract_strided_slice %238 {offsets = [0, 64], sizes = [8, 32], strides = [1, 1]} : vector<8x96xf32> to vector<8x32xf32>
    %251 = arith.addf %250, %233 : vector<8x32xf32>
    %252 = arith.mulf %247, %251 : vector<8x32xf32>
    %253 = arith.addf %249, %252 : vector<8x32xf32>
    %254 = math.tanh %253 : vector<8x32xf32>
    %255 = arith.subf %234, %254 : vector<8x32xf32>
    %256 = arith.mulf %248, %255 : vector<8x32xf32>
    %257 = arith.addf %254, %256 : vector<8x32xf32>
    %c1_i32_72 = arith.constant 1 : i32
    %258 = arith.index_cast %c1_i32_72 : i32 to index
    %c0_73 = arith.constant 0 : index
    %c0_74 = arith.constant 0 : index
    %259 = vector.load %arg11[%258, %c0_73, %c0_74] : memref<8x8x96xf32, #tpu.memory_space<vmem>>, vector<1x8x96xf32>
    %260 = vector.shape_cast %259 : vector<1x8x96xf32> to vector<8x96xf32>
    %cst_75 = arith.constant dense<0.000000e+00> : vector<8x96xf32>
    %261 = tpu.matmul %257, %230, %cst_75 {dimension_numbers = #tpu.dot_dimension_numbers<[1], [0], [0], [1], [0, 0, 1, 1], [], []>} : vector<8x32xf32>, vector<32x96xf32>, vector<8x96xf32> -> vector<8x96xf32>
    %262 = vector.extract_strided_slice %260 {offsets = [0, 0], sizes = [8, 64], strides = [1, 1]} : vector<8x96xf32> to vector<8x64xf32>
    %263 = vector.extract_strided_slice %261 {offsets = [0, 0], sizes = [8, 64], strides = [1, 1]} : vector<8x96xf32> to vector<8x64xf32>
    %264 = arith.addf %262, %263 : vector<8x64xf32>
    %265 = arith.negf %264 : vector<8x64xf32>
    %266 = math.exp %265 : vector<8x64xf32>
    %cst_76 = arith.constant 1.000000e+00 : f32
    %267 = vector.broadcast %cst_76 : f32 to vector<8x64xf32>
    %268 = arith.addf %267, %266 : vector<8x64xf32>
    %269 = arith.divf %267, %268 : vector<8x64xf32>
    %270 = vector.extract_strided_slice %269 {offsets = [0, 0], sizes = [8, 32], strides = [1, 1]} : vector<8x64xf32> to vector<8x32xf32>
    %271 = vector.extract_strided_slice %269 {offsets = [0, 32], sizes = [8, 32], strides = [1, 1]} : vector<8x64xf32> to vector<8x32xf32>
    %272 = vector.extract_strided_slice %260 {offsets = [0, 64], sizes = [8, 32], strides = [1, 1]} : vector<8x96xf32> to vector<8x32xf32>
    %273 = vector.extract_strided_slice %261 {offsets = [0, 64], sizes = [8, 32], strides = [1, 1]} : vector<8x96xf32> to vector<8x32xf32>
    %274 = arith.addf %273, %233 : vector<8x32xf32>
    %275 = arith.mulf %270, %274 : vector<8x32xf32>
    %276 = arith.addf %272, %275 : vector<8x32xf32>
    %277 = math.tanh %276 : vector<8x32xf32>
    %278 = arith.subf %257, %277 : vector<8x32xf32>
    %279 = arith.mulf %271, %278 : vector<8x32xf32>
    %280 = arith.addf %277, %279 : vector<8x32xf32>
    %c2_i32_77 = arith.constant 2 : i32
    %281 = arith.index_cast %c2_i32_77 : i32 to index
    %c0_78 = arith.constant 0 : index
    %c0_79 = arith.constant 0 : index
    %282 = vector.load %arg11[%281, %c0_78, %c0_79] : memref<8x8x96xf32, #tpu.memory_space<vmem>>, vector<1x8x96xf32>
    %283 = vector.shape_cast %282 : vector<1x8x96xf32> to vector<8x96xf32>
    %cst_80 = arith.constant dense<0.000000e+00> : vector<8x96xf32>
    %284 = tpu.matmul %280, %230, %cst_80 {dimension_numbers = #tpu.dot_dimension_numbers<[1], [0], [0], [1], [0, 0, 1, 1], [], []>} : vector<8x32xf32>, vector<32x96xf32>, vector<8x96xf32> -> vector<8x96xf32>
    %285 = vector.extract_strided_slice %283 {offsets = [0, 0], sizes = [8, 64], strides = [1, 1]} : vector<8x96xf32> to vector<8x64xf32>
    %286 = vector.extract_strided_slice %284 {offsets = [0, 0], sizes = [8, 64], strides = [1, 1]} : vector<8x96xf32> to vector<8x64xf32>
    %287 = arith.addf %285, %286 : vector<8x64xf32>
    %288 = arith.negf %287 : vector<8x64xf32>
    %289 = math.exp %288 : vector<8x64xf32>
    %cst_81 = arith.constant 1.000000e+00 : f32
    %290 = vector.broadcast %cst_81 : f32 to vector<8x64xf32>
    %291 = arith.addf %290, %289 : vector<8x64xf32>
    %292 = arith.divf %290, %291 : vector<8x64xf32>
    %293 = vector.extract_strided_slice %292 {offsets = [0, 0], sizes = [8, 32], strides = [1, 1]} : vector<8x64xf32> to vector<8x32xf32>
    %294 = vector.extract_strided_slice %292 {offsets = [0, 32], sizes = [8, 32], strides = [1, 1]} : vector<8x64xf32> to vector<8x32xf32>
    %295 = vector.extract_strided_slice %283 {offsets = [0, 64], sizes = [8, 32], strides = [1, 1]} : vector<8x96xf32> to vector<8x32xf32>
    %296 = vector.extract_strided_slice %284 {offsets = [0, 64], sizes = [8, 32], strides = [1, 1]} : vector<8x96xf32> to vector<8x32xf32>
    %297 = arith.addf %296, %233 : vector<8x32xf32>
    %298 = arith.mulf %293, %297 : vector<8x32xf32>
    %299 = arith.addf %295, %298 : vector<8x32xf32>
    %300 = math.tanh %299 : vector<8x32xf32>
    %301 = arith.subf %280, %300 : vector<8x32xf32>
    %302 = arith.mulf %294, %301 : vector<8x32xf32>
    %303 = arith.addf %300, %302 : vector<8x32xf32>
    %c3_i32_82 = arith.constant 3 : i32
    %304 = arith.index_cast %c3_i32_82 : i32 to index
    %c0_83 = arith.constant 0 : index
    %c0_84 = arith.constant 0 : index
    %305 = vector.load %arg11[%304, %c0_83, %c0_84] : memref<8x8x96xf32, #tpu.memory_space<vmem>>, vector<1x8x96xf32>
    %306 = vector.shape_cast %305 : vector<1x8x96xf32> to vector<8x96xf32>
    %cst_85 = arith.constant dense<0.000000e+00> : vector<8x96xf32>
    %307 = tpu.matmul %303, %230, %cst_85 {dimension_numbers = #tpu.dot_dimension_numbers<[1], [0], [0], [1], [0, 0, 1, 1], [], []>} : vector<8x32xf32>, vector<32x96xf32>, vector<8x96xf32> -> vector<8x96xf32>
    %308 = vector.extract_strided_slice %306 {offsets = [0, 0], sizes = [8, 64], strides = [1, 1]} : vector<8x96xf32> to vector<8x64xf32>
    %309 = vector.extract_strided_slice %307 {offsets = [0, 0], sizes = [8, 64], strides = [1, 1]} : vector<8x96xf32> to vector<8x64xf32>
    %310 = arith.addf %308, %309 : vector<8x64xf32>
    %311 = arith.negf %310 : vector<8x64xf32>
    %312 = math.exp %311 : vector<8x64xf32>
    %cst_86 = arith.constant 1.000000e+00 : f32
    %313 = vector.broadcast %cst_86 : f32 to vector<8x64xf32>
    %314 = arith.addf %313, %312 : vector<8x64xf32>
    %315 = arith.divf %313, %314 : vector<8x64xf32>
    %316 = vector.extract_strided_slice %315 {offsets = [0, 0], sizes = [8, 32], strides = [1, 1]} : vector<8x64xf32> to vector<8x32xf32>
    %317 = vector.extract_strided_slice %315 {offsets = [0, 32], sizes = [8, 32], strides = [1, 1]} : vector<8x64xf32> to vector<8x32xf32>
    %318 = vector.extract_strided_slice %306 {offsets = [0, 64], sizes = [8, 32], strides = [1, 1]} : vector<8x96xf32> to vector<8x32xf32>
    %319 = vector.extract_strided_slice %307 {offsets = [0, 64], sizes = [8, 32], strides = [1, 1]} : vector<8x96xf32> to vector<8x32xf32>
    %320 = arith.addf %319, %233 : vector<8x32xf32>
    %321 = arith.mulf %316, %320 : vector<8x32xf32>
    %322 = arith.addf %318, %321 : vector<8x32xf32>
    %323 = math.tanh %322 : vector<8x32xf32>
    %324 = arith.subf %303, %323 : vector<8x32xf32>
    %325 = arith.mulf %317, %324 : vector<8x32xf32>
    %326 = arith.addf %323, %325 : vector<8x32xf32>
    %c4_i32_87 = arith.constant 4 : i32
    %327 = arith.index_cast %c4_i32_87 : i32 to index
    %c0_88 = arith.constant 0 : index
    %c0_89 = arith.constant 0 : index
    %328 = vector.load %arg11[%327, %c0_88, %c0_89] : memref<8x8x96xf32, #tpu.memory_space<vmem>>, vector<1x8x96xf32>
    %329 = vector.shape_cast %328 : vector<1x8x96xf32> to vector<8x96xf32>
    %cst_90 = arith.constant dense<0.000000e+00> : vector<8x96xf32>
    %330 = tpu.matmul %326, %230, %cst_90 {dimension_numbers = #tpu.dot_dimension_numbers<[1], [0], [0], [1], [0, 0, 1, 1], [], []>} : vector<8x32xf32>, vector<32x96xf32>, vector<8x96xf32> -> vector<8x96xf32>
    %331 = vector.extract_strided_slice %329 {offsets = [0, 0], sizes = [8, 64], strides = [1, 1]} : vector<8x96xf32> to vector<8x64xf32>
    %332 = vector.extract_strided_slice %330 {offsets = [0, 0], sizes = [8, 64], strides = [1, 1]} : vector<8x96xf32> to vector<8x64xf32>
    %333 = arith.addf %331, %332 : vector<8x64xf32>
    %334 = arith.negf %333 : vector<8x64xf32>
    %335 = math.exp %334 : vector<8x64xf32>
    %cst_91 = arith.constant 1.000000e+00 : f32
    %336 = vector.broadcast %cst_91 : f32 to vector<8x64xf32>
    %337 = arith.addf %336, %335 : vector<8x64xf32>
    %338 = arith.divf %336, %337 : vector<8x64xf32>
    %339 = vector.extract_strided_slice %338 {offsets = [0, 0], sizes = [8, 32], strides = [1, 1]} : vector<8x64xf32> to vector<8x32xf32>
    %340 = vector.extract_strided_slice %338 {offsets = [0, 32], sizes = [8, 32], strides = [1, 1]} : vector<8x64xf32> to vector<8x32xf32>
    %341 = vector.extract_strided_slice %329 {offsets = [0, 64], sizes = [8, 32], strides = [1, 1]} : vector<8x96xf32> to vector<8x32xf32>
    %342 = vector.extract_strided_slice %330 {offsets = [0, 64], sizes = [8, 32], strides = [1, 1]} : vector<8x96xf32> to vector<8x32xf32>
    %343 = arith.addf %342, %233 : vector<8x32xf32>
    %344 = arith.mulf %339, %343 : vector<8x32xf32>
    %345 = arith.addf %341, %344 : vector<8x32xf32>
    %346 = math.tanh %345 : vector<8x32xf32>
    %347 = arith.subf %326, %346 : vector<8x32xf32>
    %348 = arith.mulf %340, %347 : vector<8x32xf32>
    %349 = arith.addf %346, %348 : vector<8x32xf32>
    %c5_i32_92 = arith.constant 5 : i32
    %350 = arith.index_cast %c5_i32_92 : i32 to index
    %c0_93 = arith.constant 0 : index
    %c0_94 = arith.constant 0 : index
    %351 = vector.load %arg11[%350, %c0_93, %c0_94] : memref<8x8x96xf32, #tpu.memory_space<vmem>>, vector<1x8x96xf32>
    %352 = vector.shape_cast %351 : vector<1x8x96xf32> to vector<8x96xf32>
    %cst_95 = arith.constant dense<0.000000e+00> : vector<8x96xf32>
    %353 = tpu.matmul %349, %230, %cst_95 {dimension_numbers = #tpu.dot_dimension_numbers<[1], [0], [0], [1], [0, 0, 1, 1], [], []>} : vector<8x32xf32>, vector<32x96xf32>, vector<8x96xf32> -> vector<8x96xf32>
    %354 = vector.extract_strided_slice %352 {offsets = [0, 0], sizes = [8, 64], strides = [1, 1]} : vector<8x96xf32> to vector<8x64xf32>
    %355 = vector.extract_strided_slice %353 {offsets = [0, 0], sizes = [8, 64], strides = [1, 1]} : vector<8x96xf32> to vector<8x64xf32>
    %356 = arith.addf %354, %355 : vector<8x64xf32>
    %357 = arith.negf %356 : vector<8x64xf32>
    %358 = math.exp %357 : vector<8x64xf32>
    %cst_96 = arith.constant 1.000000e+00 : f32
    %359 = vector.broadcast %cst_96 : f32 to vector<8x64xf32>
    %360 = arith.addf %359, %358 : vector<8x64xf32>
    %361 = arith.divf %359, %360 : vector<8x64xf32>
    %362 = vector.extract_strided_slice %361 {offsets = [0, 0], sizes = [8, 32], strides = [1, 1]} : vector<8x64xf32> to vector<8x32xf32>
    %363 = vector.extract_strided_slice %361 {offsets = [0, 32], sizes = [8, 32], strides = [1, 1]} : vector<8x64xf32> to vector<8x32xf32>
    %364 = vector.extract_strided_slice %352 {offsets = [0, 64], sizes = [8, 32], strides = [1, 1]} : vector<8x96xf32> to vector<8x32xf32>
    %365 = vector.extract_strided_slice %353 {offsets = [0, 64], sizes = [8, 32], strides = [1, 1]} : vector<8x96xf32> to vector<8x32xf32>
    %366 = arith.addf %365, %233 : vector<8x32xf32>
    %367 = arith.mulf %362, %366 : vector<8x32xf32>
    %368 = arith.addf %364, %367 : vector<8x32xf32>
    %369 = math.tanh %368 : vector<8x32xf32>
    %370 = arith.subf %349, %369 : vector<8x32xf32>
    %371 = arith.mulf %363, %370 : vector<8x32xf32>
    %372 = arith.addf %369, %371 : vector<8x32xf32>
    %c6_i32_97 = arith.constant 6 : i32
    %373 = arith.index_cast %c6_i32_97 : i32 to index
    %c0_98 = arith.constant 0 : index
    %c0_99 = arith.constant 0 : index
    %374 = vector.load %arg11[%373, %c0_98, %c0_99] : memref<8x8x96xf32, #tpu.memory_space<vmem>>, vector<1x8x96xf32>
    %375 = vector.shape_cast %374 : vector<1x8x96xf32> to vector<8x96xf32>
    %cst_100 = arith.constant dense<0.000000e+00> : vector<8x96xf32>
    %376 = tpu.matmul %372, %230, %cst_100 {dimension_numbers = #tpu.dot_dimension_numbers<[1], [0], [0], [1], [0, 0, 1, 1], [], []>} : vector<8x32xf32>, vector<32x96xf32>, vector<8x96xf32> -> vector<8x96xf32>
    %377 = vector.extract_strided_slice %375 {offsets = [0, 0], sizes = [8, 64], strides = [1, 1]} : vector<8x96xf32> to vector<8x64xf32>
    %378 = vector.extract_strided_slice %376 {offsets = [0, 0], sizes = [8, 64], strides = [1, 1]} : vector<8x96xf32> to vector<8x64xf32>
    %379 = arith.addf %377, %378 : vector<8x64xf32>
    %380 = arith.negf %379 : vector<8x64xf32>
    %381 = math.exp %380 : vector<8x64xf32>
    %cst_101 = arith.constant 1.000000e+00 : f32
    %382 = vector.broadcast %cst_101 : f32 to vector<8x64xf32>
    %383 = arith.addf %382, %381 : vector<8x64xf32>
    %384 = arith.divf %382, %383 : vector<8x64xf32>
    %385 = vector.extract_strided_slice %384 {offsets = [0, 0], sizes = [8, 32], strides = [1, 1]} : vector<8x64xf32> to vector<8x32xf32>
    %386 = vector.extract_strided_slice %384 {offsets = [0, 32], sizes = [8, 32], strides = [1, 1]} : vector<8x64xf32> to vector<8x32xf32>
    %387 = vector.extract_strided_slice %375 {offsets = [0, 64], sizes = [8, 32], strides = [1, 1]} : vector<8x96xf32> to vector<8x32xf32>
    %388 = vector.extract_strided_slice %376 {offsets = [0, 64], sizes = [8, 32], strides = [1, 1]} : vector<8x96xf32> to vector<8x32xf32>
    %389 = arith.addf %388, %233 : vector<8x32xf32>
    %390 = arith.mulf %385, %389 : vector<8x32xf32>
    %391 = arith.addf %387, %390 : vector<8x32xf32>
    %392 = math.tanh %391 : vector<8x32xf32>
    %393 = arith.subf %372, %392 : vector<8x32xf32>
    %394 = arith.mulf %386, %393 : vector<8x32xf32>
    %395 = arith.addf %392, %394 : vector<8x32xf32>
    %c7_i32_102 = arith.constant 7 : i32
    %396 = arith.index_cast %c7_i32_102 : i32 to index
    %c0_103 = arith.constant 0 : index
    %c0_104 = arith.constant 0 : index
    %397 = vector.load %arg11[%396, %c0_103, %c0_104] : memref<8x8x96xf32, #tpu.memory_space<vmem>>, vector<1x8x96xf32>
    %398 = vector.shape_cast %397 : vector<1x8x96xf32> to vector<8x96xf32>
    %cst_105 = arith.constant dense<0.000000e+00> : vector<8x96xf32>
    %399 = tpu.matmul %395, %230, %cst_105 {dimension_numbers = #tpu.dot_dimension_numbers<[1], [0], [0], [1], [0, 0, 1, 1], [], []>} : vector<8x32xf32>, vector<32x96xf32>, vector<8x96xf32> -> vector<8x96xf32>
    %400 = vector.extract_strided_slice %398 {offsets = [0, 0], sizes = [8, 64], strides = [1, 1]} : vector<8x96xf32> to vector<8x64xf32>
    %401 = vector.extract_strided_slice %399 {offsets = [0, 0], sizes = [8, 64], strides = [1, 1]} : vector<8x96xf32> to vector<8x64xf32>
    %402 = arith.addf %400, %401 : vector<8x64xf32>
    %403 = arith.negf %402 : vector<8x64xf32>
    %404 = math.exp %403 : vector<8x64xf32>
    %cst_106 = arith.constant 1.000000e+00 : f32
    %405 = vector.broadcast %cst_106 : f32 to vector<8x64xf32>
    %406 = arith.addf %405, %404 : vector<8x64xf32>
    %407 = arith.divf %405, %406 : vector<8x64xf32>
    %408 = vector.extract_strided_slice %407 {offsets = [0, 0], sizes = [8, 32], strides = [1, 1]} : vector<8x64xf32> to vector<8x32xf32>
    %409 = vector.extract_strided_slice %407 {offsets = [0, 32], sizes = [8, 32], strides = [1, 1]} : vector<8x64xf32> to vector<8x32xf32>
    %410 = vector.extract_strided_slice %398 {offsets = [0, 64], sizes = [8, 32], strides = [1, 1]} : vector<8x96xf32> to vector<8x32xf32>
    %411 = vector.extract_strided_slice %399 {offsets = [0, 64], sizes = [8, 32], strides = [1, 1]} : vector<8x96xf32> to vector<8x32xf32>
    %412 = arith.addf %411, %233 : vector<8x32xf32>
    %413 = arith.mulf %408, %412 : vector<8x32xf32>
    %414 = arith.addf %410, %413 : vector<8x32xf32>
    %415 = math.tanh %414 : vector<8x32xf32>
    %416 = arith.subf %395, %415 : vector<8x32xf32>
    %417 = arith.mulf %409, %416 : vector<8x32xf32>
    %418 = arith.addf %415, %417 : vector<8x32xf32>
    %c8_i32_107 = arith.constant 8 : i32
    %c0_108 = arith.constant 0 : index
    %c0_109 = arith.constant 0 : index
    %419 = vector.load %arg7[%c0_108, %c0_109] : memref<32x4xf32, #tpu.memory_space<vmem>>, vector<32x4xf32>
    %cst_110 = arith.constant dense<0.000000e+00> : vector<8x4xf32>
    %420 = tpu.matmul %418, %419, %cst_110 {dimension_numbers = #tpu.dot_dimension_numbers<[1], [0], [0], [1], [0, 0, 1, 1], [], []>} : vector<8x32xf32>, vector<32x4xf32>, vector<8x4xf32> -> vector<8x4xf32>
    %c0_111 = arith.constant 0 : index
    %c0_112 = arith.constant 0 : index
    %421 = vector.load %arg8[%c0_111, %c0_112] : memref<1x4xf32, #tpu.memory_space<vmem>>, vector<1x4xf32>
    %422 = vector.broadcast %421 : vector<1x4xf32> to vector<8x4xf32>
    %423 = arith.addf %420, %422 : vector<8x4xf32>
    %c0_113 = arith.constant 0 : index
    %c0_114 = arith.constant 0 : index
    %424 = vector.load %arg9[%c0_113, %c0_114] : memref<8x4xf32, #tpu.memory_space<vmem>>, vector<8x4xf32>
    tpu.vector_store %arg9[%c0_113, %c0_114], %423 {strides = array<i32>} : memref<8x4xf32, #tpu.memory_space<vmem>>, vector<8x4xf32>,
    return
  }
}

</mosaic_0001>

<bundles_post_ra>
// kernel: gru_forward.1
= control target key start
LH: loop header
LB: loop body
LE: loop exit
PB: predicated region body
PF: predicated region fallthrough
CT: control target
= control target key end

     0   :  { %v2603_v0 = vmov 0.0|0.0   ;;  %vm2604_vm0 = vmmov 0   ;;  %v2605_v4 = vmov 0.0   ;;  %s2606_s19 = smov 64   ;;  %s2607_s20 = smov 96   ;;  %vm43_vm1 = vcmask 261120   ;;  %s3015_s1 = inlined_call_operand.vmem [shape: f32[32,96], index: 1, kind: input, shape index: {}]   ;;  %s3016_s2 = inlined_call_operand.vmem [shape: f32[1,32], index: 2, kind: input, shape index: {}]   ;;  %s3017_s0 = inlined_call_operand.vmem [shape: f32[8,8,96], index: 0, kind: input, shape index: {}]   ;;  %s3018_s3 = inlined_call_operand.vmem [shape: f32[32,96], index: 3, kind: input, shape index: {}]   ;;  %s3019_s4 = inlined_call_operand.vmem [shape: f32[1,96], index: 4, kind: input, shape index: {}]   ;;  %s3020_s5 = inlined_call_operand.vmem [shape: f32[32,96], index: 5, kind: input, shape index: {}]   ;;  %s3021_s6 = inlined_call_operand.vmem [shape: f32[1,32], index: 6, kind: input, shape index: {}]   ;;  %s3022_s7 = inlined_call_operand.vmem [shape: f32[32,4], index: 7, kind: input, shape index: {}]   ;;  %s3023_s8 = inlined_call_operand.vmem [shape: f32[1,4], index: 8, kind: input, shape index: {}]   ;;  %s3024_s9 = inlined_call_operand.vmem [shape: f32[8,4], index: 9, kind: output, shape index: {}]  }
   0x1   :  { %2391 = vmatprep.subr.bf16.mxu0 %v2603_v0  ;;  %v32_v1 = vld [vmem:[%s3015_s1] sm:$0xff]  ;;  %v33_v2 = vld [vmem:[%s3015_s1 + $0x8] sm:$0xff]  ;;  %v34_v3 = vld [vmem:[%s3015_s1 + $0x10] sm:$0xff]  ;;  %2192 = vmatprep.mubr.msk.f32.mxu0 %vm2604_vm0, %v2605_v4  ;;  %s2608_s21 = smov 32   ;;  %vm1073_vm2 = vcmask 785408   ;;  %vm2031_vm3 = vcmask 31744  }
   0x2   :  { %v2671_v5 = vpack.c.bf16 %v33_v2, %v32_v1  ;;  %v35_v6 = vld [vmem:[%s3015_s1 + $0x18] sm:$0xff]  ;;  %v2037_v7 = vld [vmem:[%s3016_s2] ss:$0 sm:$0xff]  ;;  %2397 = vmatprep.subr.bf16.mxu1 %v2603_v0  ;;  %2203 = vmatprep.mubr.msk.f32.mxu1 %vm2604_vm0, %v2605_v4  ;;  %v2039_v33 = vld [vmem:[%s3017_s0 + $0x8] sm:$0xff] }
   0x3   :  { %124 = vrot.lane.b32.xlu0 %v2037_v7, %s2606_s19  ;;  %v2684_v8 = vpack.c.bf16 %v35_v6, %v34_v3  ;;  %v42_v13 = vld [vmem:[%s3017_s0] sm:$0xff]  ;;  %v2042_v53 = vld [vmem:[%s3017_s0 + $0x10] sm:$0xff] }
   0x4   :  { %2393 = vmatpush3.bf16.msra.mxu0 %v2671_v5  ;;  %2399 = vmatpush3.bf16.msra.mxu1 %v2671_v5 }
   0x5   :  { %2394 = vmatprep.subr.bf16.mxu0 %v2603_v0  ;;  %2400 = vmatprep.subr.bf16.mxu1 %v2603_v0 }
   0x8   :  { %2396 = vmatpush3.bf16.msra.mxu0 %v2684_v8  ;;  %2402 = vmatpush3.bf16.msra.mxu1 %v2684_v8 }
   0x9   :  { %2403 = vmatprep.subr.bf16.mxu0 %v2603_v0  ;;  %2409 = vmatprep.subr.bf16.mxu1 %v2603_v0 }
   0xb   :  { %2193 = vmatmul.mubr.f32.vlgmr.msra.gmra.mrb[0].mxu0 %v2605_v4 }
   0xc   :  { %2405 = vmatpush3.bf16.msra.mxu0 %v2671_v5  ;;  %2214 = vmatprep.mubr.msk.f32.mxu0 %vm2604_vm0, %v2605_v4 }
   0xd   :  { %2406 = vmatprep.subr.bf16.mxu0 %v2603_v0 }
  0x10   :  { %2408 = vmatpush3.bf16.msra.mxu0 %v2684_v8 }
  0x11   :  { %2415 = vmatprep.subr.bf16.mxu0 %v2603_v0 }
  0x75   :  { %v2700_v9 = vpop.permute.xlu0 %124 }
  0xde   :  { %v113_v10 = vpop.f32.mrb[0].mxu0 }
  0xdf   :  { %v127_v11 = vadd.f32 %v2700_v9, %v113_v10  ;;  %v2194_v12 = vpop.f32.mrb[1].mxu0  ;;  %v117_v14 = vadd.f32 %v113_v10, %v42_v13 }
  0xe1   :  { %129 = vrot.lane.b32.xlu0 %v127_v11, %s2606_s19  ;;  %v2038_v15 = vmul.f32 -1.442695, %v117_v14  ;;  %v2045_v14 = vld [vmem:[%s3017_s0 + $0x18] sm:$0xff] }
  0xe3   :  { %2507 = vpow2.f32 %v2038_v15 }
  0xed   :  { %v2508_v16 = vpop.eup %2507 }
  0xee   :  { %v121_v17 = vadd.f32 1.0, %v2508_v16 }
  0xf0   :  { %2509 = vrcp.f32 %v121_v17 }
  0xfa   :  { %v2510_v18 = vpop.eup %2509 }
 0x153   :  { %v130_v19 = vpop.permute.xlu0 %129 }
 0x154   :  { %v132_v20 = vmul.f32 %v2510_v18, %v130_v19 }
 0x156   :  { %134 = vrot.lane.b32.xlu1 %v132_v20, %s2606_s19 }
 0x1c8   :  { %v135_v21 = vpop.permute.xlu1 %134 }
 0x1c9   :  { %v137_v22 = vadd.f32 %v135_v21, %v42_v13 }
 0x1cb   :  { %2511 = vtanh.f32 %v137_v22 }
 0x1d5   :  { %v2512_v23 = vpop.eup %2511 }
 0x1d6   :  { %v139_v24 = vsub.f32 0.0, %v2512_v23 }
 0x1d8   :  { %141 = vrot.lane.b32.xlu1 %v139_v24, %s2607_s20 }
 0x24a   :  { %v142_v25 = vpop.permute.xlu1 %141 }
 0x24b   :  { %v144_v26 = vmul.f32 %v2510_v18, %v142_v25 }
 0x24d   :  { %146 = vrot.lane.b32.xlu0 %v144_v26, %s2608_s21 }
 0x2bf   :  { %v147_v27 = vpop.permute.xlu0 %146 }
 0x2c0   :  { %v149_v28 = vadd.f32 %v2512_v23, %v147_v27 }
 0x2c2   :  { %151 = vrot.lane.b32.xlu1 %v149_v28, %s2606_s19 }
 0x334   :  { %v152_v29 = vpop.permute.xlu1 %151 }
 0x335   :  { %154 = vst.msk [vmem:[#allocation2] sm:$0xff] %vm43_vm1, %v152_v29  ;;  %2204 = vmatmul.mubr.msk.f32.vlgmr.msra.gmra.mrb[0].mxu1 %vm43_vm1, %v152_v29 }
 0x336   :  { %2411 = vmatpush3.bf16.msra.mxu1 %v2671_v5  ;;  %2225 = vmatprep.mubr.msk.f32.mxu1 %vm2604_vm0, %v2605_v4 }
 0x337   :  { %2412 = vmatprep.subr.bf16.mxu1 %v2603_v0 }
 0x33a   :  { %2414 = vmatpush3.bf16.msra.mxu1 %v2684_v8 }
 0x33b   :  { %2421 = vmatprep.subr.bf16.mxu1 %v2603_v0 }
 0x408   :  { %v225_v30 = vpop.f32.mrb[0].mxu1 }
 0x409   :  { %v236_v31 = vadd.f32 %v225_v30, %v2700_v9  ;;  %v2205_v32 = vpop.f32.mrb[1].mxu1  ;;  %v229_v34 = vadd.f32 %v2039_v33, %v225_v30 }
 0x40b   :  { %238 = vrot.lane.b32.xlu0 %v236_v31, %s2606_s19  ;;  %v2041_v35 = vmul.f32 -1.442695, %v229_v34  ;;  %v2048_v34 = vld [vmem:[%s3017_s0 + $0x20] sm:$0xff] }
 0x40d   :  { %2513 = vpow2.f32 %v2041_v35 }
 0x417   :  { %v2514_v36 = vpop.eup %2513 }
 0x418   :  { %v233_v37 = vadd.f32 1.0, %v2514_v36 }
 0x41a   :  { %2515 = vrcp.f32 %v233_v37 }
 0x424   :  { %v2516_v38 = vpop.eup %2515 }
 0x47d   :  { %v239_v39 = vpop.permute.xlu0 %238 }
 0x47e   :  { %v241_v40 = vmul.f32 %v2516_v38, %v239_v39 }
 0x480   :  { %243 = vrot.lane.b32.xlu1 %v241_v40, %s2606_s19 }
 0x4f2   :  { %v244_v41 = vpop.permute.xlu1 %243 }
 0x4f3   :  { %v246_v42 = vadd.f32 %v2039_v33, %v244_v41 }
 0x4f5   :  { %2517 = vtanh.f32 %v246_v42 }
 0x4ff   :  { %v2518_v43 = vpop.eup %2517 }
 0x500   :  { %v248_v44 = vsub.f32 %v149_v28, %v2518_v43 }
 0x502   :  { %250 = vrot.lane.b32.xlu0 %v248_v44, %s2607_s20 }
 0x574   :  { %v251_v45 = vpop.permute.xlu0 %250 }
 0x575   :  { %v253_v46 = vmul.f32 %v2516_v38, %v251_v45 }
 0x577   :  { %255 = vrot.lane.b32.xlu1 %v253_v46, %s2608_s21 }
 0x5e9   :  { %v256_v47 = vpop.permute.xlu1 %255 }
 0x5ea   :  { %v258_v48 = vadd.f32 %v2518_v43, %v256_v47 }
 0x5ec   :  { %260 = vrot.lane.b32.xlu0 %v258_v48, %s2606_s19 }
 0x65e   :  { %v261_v49 = vpop.permute.xlu0 %260 }
 0x65f   :  { %264 = vst.msk [vmem:[#allocation2 + $0x8] sm:$0xff] %vm43_vm1, %v261_v49  ;;  %2215 = vmatmul.mubr.msk.f32.vlgmr.msra.gmra.mrb[2].mxu0 %vm43_vm1, %v261_v49 }
 0x660   :  { %2417 = vmatpush3.bf16.msra.mxu0 %v2671_v5  ;;  %2236 = vmatprep.mubr.msk.f32.mxu0 %vm2604_vm0, %v2605_v4 }
 0x661   :  { %2418 = vmatprep.subr.bf16.mxu0 %v2603_v0 }
 0x664   :  { %2420 = vmatpush3.bf16.msra.mxu0 %v2684_v8 }
 0x665   :  { %2427 = vmatprep.subr.bf16.mxu0 %v2603_v0 }
 0x732   :  { %v335_v50 = vpop.f32.mrb[2].mxu0 }
 0x733   :  { %v346_v51 = vadd.f32 %v335_v50, %v2700_v9  ;;  %v2216_v52 = vpop.f32.mrb[3].mxu0  ;;  %v339_v54 = vadd.f32 %v2042_v53, %v335_v50 }
 0x735   :  { %348 = vrot.lane.b32.xlu1 %v346_v51, %s2606_s19  ;;  %v2044_v55 = vmul.f32 -1.442695, %v339_v54  ;;  %v2051_v54 = vld [vmem:[%s3017_s0 + $0x28] sm:$0xff] }
 0x737   :  { %2519 = vpow2.f32 %v2044_v55 }
 0x741   :  { %v2520_v56 = vpop.eup %2519 }
 0x742   :  { %v343_v57 = vadd.f32 1.0, %v2520_v56 }
 0x744   :  { %2521 = vrcp.f32 %v343_v57 }
 0x74e   :  { %v2522_v58 = vpop.eup %2521 }
 0x7a7   :  { %v349_v59 = vpop.permute.xlu1 %348 }
 0x7a8   :  { %v351_v60 = vmul.f32 %v2522_v58, %v349_v59 }
 0x7aa   :  { %353 = vrot.lane.b32.xlu0 %v351_v60, %s2606_s19 }
 0x81c   :  { %v354_v61 = vpop.permute.xlu0 %353 }
 0x81d   :  { %v356_v62 = vadd.f32 %v2042_v53, %v354_v61 }
 0x81f   :  { %2523 = vtanh.f32 %v356_v62 }
 0x829   :  { %v2524_v63 = vpop.eup %2523 }
 0x82a   :  { %v358_v1 = vsub.f32 %v258_v48, %v2524_v63 }
 0x82c   :  { %360 = vrot.lane.b32.xlu1 %v358_v1, %s2607_s20  ;;  %v933_v1 = vld [vmem:[%s3018_s3] sm:$0xff] }
 0x89e   :  { %v361_v2 = vpop.permute.xlu1 %360 }
 0x89f   :  { %v363_v3 = vmul.f32 %v2522_v58, %v361_v2  ;;  %v934_v2 = vld [vmem:[%s3018_s3 + $0x8] sm:$0xff] }
 0x8a1   :  { %365 = vrot.lane.b32.xlu0 %v363_v3, %s2608_s21  ;;  %v2439_v3 = vpack.c.bf16 %v934_v2, %v933_v1 }
 0x913   :  { %v366_v6 = vpop.permute.xlu0 %365 }
 0x914   :  { %v368_v7 = vadd.f32 %v2524_v63, %v366_v6 }
 0x916   :  { %370 = vrot.lane.b32.xlu1 %v368_v7, %s2606_s19 }
 0x988   :  { %v371_v10 = vpop.permute.xlu1 %370 }
 0x989   :  { %374 = vst.msk [vmem:[#allocation2 + $0x10] sm:$0xff] %vm43_vm1, %v371_v10  ;;  %2226 = vmatmul.mubr.msk.f32.vlgmr.msra.gmra.mrb[2].mxu1 %vm43_vm1, %v371_v10 }
 0x98a   :  { %2423 = vmatpush3.bf16.msra.mxu1 %v2671_v5  ;;  %2247 = vmatprep.mubr.msk.f32.mxu1 %vm2604_vm0, %v2605_v4 }
 0x98b   :  { %2424 = vmatprep.subr.bf16.mxu1 %v2603_v0 }
 0x98e   :  { %2426 = vmatpush3.bf16.msra.mxu1 %v2684_v8 }
 0x98f   :  { %2433 = vmatprep.subr.bf16.mxu1 %v2603_v0 }
 0xa5c   :  { %v445_v11 = vpop.f32.mrb[2].mxu1 }
 0xa5d   :  { %v456_v12 = vadd.f32 %v445_v11, %v2700_v9  ;;  %v2227_v13 = vpop.f32.mrb[3].mxu1  ;;  %v449_v15 = vadd.f32 %v2045_v14, %v445_v11 }
 0xa5e   :  { %v936_v13 = vld [vmem:[%s3018_s3 + $0x18] sm:$0xff] }
 0xa5f   :  { %458 = vrot.lane.b32.xlu0 %v456_v12, %s2606_s19  ;;  %v2047_v16 = vmul.f32 -1.442695, %v449_v15  ;;  %v935_v12 = vld [vmem:[%s3018_s3 + $0x10] sm:$0xff] }
 0xa61   :  { %2525 = vpow2.f32 %v2047_v16  ;;  %v925_v16 = vld [vmem:[#allocation2] sm:$0xff] }
 0xa6b   :  { %v2526_v17 = vpop.eup %2525 }
 0xa6c   :  { %v453_v18 = vadd.f32 1.0, %v2526_v17  ;;  %v926_v17 = vld [vmem:[#allocation2 + $0x8] sm:$0xff] }
 0xa6e   :  { %2527 = vrcp.f32 %v453_v18  ;;  %v927_v18 = vld [vmem:[#allocation2 + $0x10] sm:$0xff] }
 0xa78   :  { %v2528_v19 = vpop.eup %2527 }
 0xad1   :  { %v459_v20 = vpop.permute.xlu0 %458 }
 0xad2   :  { %v461_v21 = vmul.f32 %v2528_v19, %v459_v20 }
 0xad4   :  { %463 = vrot.lane.b32.xlu1 %v461_v21, %s2606_s19 }
 0xb46   :  { %v464_v22 = vpop.permute.xlu1 %463 }
 0xb47   :  { %v466_v23 = vadd.f32 %v2045_v14, %v464_v22  ;;  %v2443_v14 = vpack.c.bf16 %v936_v13, %v935_v12 }
 0xb49   :  { %2529 = vtanh.f32 %v466_v23 }
 0xb53   :  { %v2530_v24 = vpop.eup %2529 }
 0xb54   :  { %v468_v25 = vsub.f32 %v368_v7, %v2530_v24 }
 0xb56   :  { %470 = vrot.lane.b32.xlu0 %v468_v25, %s2607_s20  ;;  %v2824_v25 = vld [vmem:[%s3019_s4] ss:$0 sm:$0xff] }
 0xbc8   :  { %v471_v26 = vpop.permute.xlu0 %470 }
 0xbc9   :  { %v473_v27 = vmul.f32 %v2528_v19, %v471_v26 }
 0xbcb   :  { %475 = vrot.lane.b32.xlu1 %v473_v27, %s2608_s21 }
 0xc3d   :  { %v476_v28 = vpop.permute.xlu1 %475 }
 0xc3e   :  { %v478_v29 = vadd.f32 %v2530_v24, %v476_v28 }
 0xc40   :  { %480 = vrot.lane.b32.xlu0 %v478_v29, %s2606_s19 }
 0xcb2   :  { %v481_v30 = vpop.permute.xlu0 %480 }
 0xcb3   :  { %484 = vst.msk [vmem:[#allocation2 + $0x18] sm:$0xff] %vm43_vm1, %v481_v30  ;;  %2237 = vmatmul.mubr.msk.f32.vlgmr.msra.gmra.mrb[4].mxu0 %vm43_vm1, %v481_v30 }
 0xcb4   :  { %2429 = vmatpush3.bf16.msra.mxu0 %v2671_v5  ;;  %2258 = vmatprep.mubr.msk.f32.mxu0 %vm2604_vm0, %v2605_v4 }
 0xcb5   :  { %2430 = vmatprep.subr.bf16.mxu0 %v2603_v0 }
 0xcb8   :  { %2432 = vmatpush3.bf16.msra.mxu0 %v2684_v8 }
 0xcb9   :  { %2440 = vmatprep.subr.bf16.mxu0 %v2439_v3 }
 0xcba   :  { %v928_v19 = vld [vmem:[#allocation2 + $0x18] sm:$0xff] }
 0xd86   :  { %v555_v31 = vpop.f32.mrb[4].mxu0 }
 0xd87   :  { %v566_v32 = vadd.f32 %v555_v31, %v2700_v9  ;;  %v2238_v33 = vpop.f32.mrb[5].mxu0  ;;  %v559_v35 = vadd.f32 %v2048_v34, %v555_v31 }
 0xd89   :  { %568 = vrot.lane.b32.xlu1 %v566_v32, %s2606_s19  ;;  %v2050_v36 = vmul.f32 -1.442695, %v559_v35 }
 0xd8b   :  { %2531 = vpow2.f32 %v2050_v36 }
 0xd95   :  { %v2532_v37 = vpop.eup %2531 }
 0xd96   :  { %v563_v38 = vadd.f32 1.0, %v2532_v37 }
 0xd98   :  { %2533 = vrcp.f32 %v563_v38  ;;  %v2054_v38 = vld [vmem:[%s3017_s0 + $0x30] sm:$0xff] }
 0xda2   :  { %v2534_v39 = vpop.eup %2533 }
 0xdfb   :  { %v569_v40 = vpop.permute.xlu1 %568 }
 0xdfc   :  { %v571_v41 = vmul.f32 %v2534_v39, %v569_v40 }
 0xdfe   :  { %573 = vrot.lane.b32.xlu0 %v571_v41, %s2606_s19 }
 0xe70   :  { %v574_v42 = vpop.permute.xlu0 %573 }
 0xe71   :  { %v576_v43 = vadd.f32 %v2048_v34, %v574_v42 }
 0xe73   :  { %2535 = vtanh.f32 %v576_v43 }
 0xe7d   :  { %v2536_v44 = vpop.eup %2535 }
 0xe7e   :  { %v578_v45 = vsub.f32 %v478_v29, %v2536_v44 }
 0xe80   :  { %580 = vrot.lane.b32.xlu1 %v578_v45, %s2607_s20 }
 0xef2   :  { %v581_v46 = vpop.permute.xlu1 %580 }
 0xef3   :  { %v583_v47 = vmul.f32 %v2534_v39, %v581_v46 }
 0xef5   :  { %585 = vrot.lane.b32.xlu0 %v583_v47, %s2608_s21 }
 0xf67   :  { %v586_v48 = vpop.permute.xlu0 %585 }
 0xf68   :  { %v588_v49 = vadd.f32 %v2536_v44, %v586_v48 }
 0xf6a   :  { %590 = vrot.lane.b32.xlu1 %v588_v49, %s2606_s19 }
 0xfdc   :  { %v591_v50 = vpop.permute.xlu1 %590 }
 0xfdd   :  { %594 = vst.msk [vmem:[#allocation2 + $0x20] sm:$0xff] %vm43_vm1, %v591_v50  ;;  %2248 = vmatmul.mubr.msk.f32.vlgmr.msra.gmra.mrb[4].mxu1 %vm43_vm1, %v591_v50 }
 0xfde   :  { %2435 = vmatpush3.bf16.msra.mxu1 %v2671_v5  ;;  %2269 = vmatprep.mubr.msk.f32.mxu1 %vm2604_vm0, %v2605_v4 }
 0xfdf   :  { %2436 = vmatprep.subr.bf16.mxu1 %v2603_v0 }
 0xfe2   :  { %2438 = vmatpush3.bf16.msra.mxu1 %v2684_v8 }
 0xfe3   :  { %2447 = vmatprep.subr.bf16.mxu1 %v2603_v0 }
 0xfe4   :  { %v929_v20 = vld [vmem:[#allocation2 + $0x20] sm:$0xff] }
0x10b0   :  { %v665_v51 = vpop.f32.mrb[4].mxu1 }
0x10b1   :  { %v676_v52 = vadd.f32 %v665_v51, %v2700_v9  ;;  %v2249_v53 = vpop.f32.mrb[5].mxu1  ;;  %v669_v5 = vadd.f32 %v2051_v54, %v665_v51 }
0x10b2   :  { %v1083_v53 = vld [vmem:[%s3020_s5 + $0x8] sm:$0xff] }
0x10b3   :  { %678 = vrot.lane.b32.xlu0 %v676_v52, %s2606_s19  ;;  %v2053_v55 = vmul.f32 -1.442695, %v669_v5  ;;  %v1082_v52 = vld [vmem:[%s3020_s5] sm:$0xff]  ;;  %v1084_v5 = vld [vmem:[%s3020_s5 + $0x10] sm:$0xff] }
0x10b5   :  { %2537 = vpow2.f32 %v2053_v55  ;;  %v1085_v55 = vld [vmem:[%s3020_s5 + $0x18] sm:$0xff] }
0x10bf   :  { %v2538_v56 = vpop.eup %2537 }
0x10c0   :  { %v673_v57 = vadd.f32 1.0, %v2538_v56  ;;  %v2861_v56 = vpack.c.bf16 %v1085_v55, %v1084_v5 }
0x10c2   :  { %2539 = vrcp.f32 %v673_v57  ;;  %v2069_v57 = vld [vmem:[%s3021_s6] ss:$0 sm:$0xff] }
0x10cc   :  { %v2540_v58 = vpop.eup %2539 }
0x1125   :  { %v679_v8 = vpop.permute.xlu0 %678 }
0x1126   :  { %v681_v59 = vmul.f32 %v2540_v58, %v679_v8 }
0x1128   :  { %683 = vrot.lane.b32.xlu1 %v681_v59, %s2606_s19 }
0x119a   :  { %v684_v60 = vpop.permute.xlu1 %683 }
0x119b   :  { %v686_v61 = vadd.f32 %v2051_v54, %v684_v60  ;;  %v2851_v54 = vpack.c.bf16 %v1083_v53, %v1082_v52 }
0x119d   :  { %2541 = vtanh.f32 %v686_v61 }
0x11a7   :  { %v2542_v62 = vpop.eup %2541 }
0x11a8   :  { %v688_v63 = vsub.f32 %v588_v49, %v2542_v62 }
0x11aa   :  { %690 = vrot.lane.b32.xlu0 %v688_v63, %s2607_s20 }
0x121c   :  { %v691_v6 = vpop.permute.xlu0 %690 }
0x121d   :  { %v693_v7 = vmul.f32 %v2540_v58, %v691_v6 }
0x121f   :  { %695 = vrot.lane.b32.xlu1 %v693_v7, %s2608_s21 }
0x1291   :  { %v696_v10 = vpop.permute.xlu1 %695 }
0x1292   :  { %v2800_v11 = vadd.f32 %v2542_v62, %v696_v10 }
0x1294   :  { %700 = vrot.lane.b32.xlu0 %v2800_v11, %s2606_s19 }
0x1306   :  { %v701_v15 = vpop.permute.xlu0 %700 }
0x1307   :  { %704 = vst.msk [vmem:[#allocation2 + $0x28] sm:$0xff] %vm43_vm1, %v701_v15  ;;  %2259 = vmatmul.mubr.msk.f32.vlgmr.msra.gmra.mrb[6].mxu0 %vm43_vm1, %v701_v15 }
0x1308   :  { %2442 = vmatpush3.bf16.msra.mxu0 %v2439_v3  ;;  %2280 = vmatprep.mubr.msk.f32.mxu0 %vm43_vm1, %v925_v16 }
0x1309   :  { %2444 = vmatprep.subr.bf16.mxu0 %v2443_v14 }
0x130c   :  { %2446 = vmatpush3.bf16.msra.mxu0 %v2443_v14 }
0x130d   :  { %2459 = vmatprep.subr.bf16.mxu0 %v2603_v0 }
0x130e   :  { %v930_v21 = vld [vmem:[#allocation2 + $0x28] sm:$0xff] }
0x130f   :  { %2281 = vmatmul.mubr.msk.f32.vlgmr.msra.gmra.mrb[8].mxu0 %vm43_vm1, %v926_v17 }
0x1310   :  { %2283 = vmatprep.mubr.msk.f32.mxu0 %vm43_vm1, %v927_v18  ;;  %2461 = vmatpush3.bf16.msra.mxu0 %v2851_v54 }
0x1311   :  { %2462 = vmatprep.subr.bf16.mxu0 %v2603_v0 }
0x1313   :  { %2284 = vmatmul.mubr.msk.f32.gmra.mrb[10].mxu0 %vm43_vm1, %v928_v19 }
0x1314   :  { %2286 = vmatprep.mubr.msk.f32.mxu0 %vm43_vm1, %v929_v20  ;;  %2464 = vmatpush3.bf16.msra.mxu0 %v2861_v56 }
0x1315   :  { %2471 = vmatprep.subr.bf16.mxu0 %v2603_v0 }
0x1317   :  { %2287 = vmatmul.mubr.msk.f32.gmra.mrb[12].mxu0 %vm43_vm1, %v930_v21 }
0x13da   :  { %v775_v22 = vpop.f32.mrb[6].mxu0 }
0x13db   :  { %v786_v23 = vadd.f32 %v775_v22, %v2700_v9  ;;  %v2260_v24 = vpop.f32.mrb[7].mxu0  ;;  %v779_v39 = vadd.f32 %v2054_v38, %v775_v22 }
0x13dd   :  { %788 = vrot.lane.b32.xlu1 %v786_v23, %s2606_s19  ;;  %v2056_v40 = vmul.f32 -1.442695, %v779_v39  ;;  %v2057_v23 = vld [vmem:[%s3017_s0 + $0x38] sm:$0xff] }
0x13df   :  { %2543 = vpow2.f32 %v2056_v40 }
0x13e2   :  { %v2282_v26 = vpop.f32.mrb[8].mxu0 }
0x13e3   :  { %v1040_v27 = vadd.f32 %v2282_v26, %v2824_v25  ;;  %v1034_v28 = vpop.f32.mrb[9].mxu0 }
0x13e4   :  { %v1035_v29 = vadd.f32 %v2824_v25, %v1034_v28 }
0x13e5   :  { %1075 = vst.msk [vmem:[#allocation3 + $0x8] sm:$0xff] %vm1073_vm2, %v1040_v27 }
0x13e6   :  { %1074 = vst.msk [vmem:[#allocation3] sm:$0xff] %vm1073_vm2, %v1035_v29  ;;  %v2285_v30 = vpop.f32.mrb[10].mxu0 }
0x13e7   :  { %v1050_v31 = vadd.f32 %v2285_v30, %v2824_v25  ;;  %v1044_v32 = vpop.f32.mrb[11].mxu0 }
0x13e8   :  { %v1045_v33 = vadd.f32 %v2824_v25, %v1044_v32 }
0x13e9   :  { %1077 = vst.msk [vmem:[#allocation3 + $0x18] sm:$0xff] %vm1073_vm2, %v1050_v31  ;;  %v2544_v41 = vpop.eup %2543 }
0x13ea   :  { %1076 = vst.msk [vmem:[#allocation3 + $0x10] sm:$0xff] %vm1073_vm2, %v1045_v33  ;;  %v2288_v34 = vpop.f32.mrb[12].mxu0  ;;  %v783_v42 = vadd.f32 1.0, %v2544_v41 }
0x13eb   :  { %v1060_v35 = vadd.f32 %v2288_v34, %v2824_v25  ;;  %v1054_v36 = vpop.f32.mrb[13].mxu0 }
0x13ec   :  { %v1055_v37 = vadd.f32 %v2824_v25, %v1054_v36  ;;  %2545 = vrcp.f32 %v783_v42 }
0x13ed   :  { %1079 = vst.msk [vmem:[#allocation3 + $0x28] sm:$0xff] %vm1073_vm2, %v1060_v35  ;;  %v1092_v6 = vld [vmem:[#allocation3] sm:$0xff] }
0x13ee   :  { %1078 = vst.msk [vmem:[#allocation3 + $0x20] sm:$0xff] %vm1073_vm2, %v1055_v37 }
0x13f6   :  { %v2546_v43 = vpop.eup %2545 }
0x144f   :  { %v789_v44 = vpop.permute.xlu1 %788 }
0x1450   :  { %v791_v45 = vmul.f32 %v2546_v43, %v789_v44 }
0x1452   :  { %793 = vrot.lane.b32.xlu0 %v791_v45, %s2606_s19  ;;  %v1197_v45 = vld [vmem:[#allocation3 + $0x8] sm:$0xff] }
0x14c4   :  { %v794_v46 = vpop.permute.xlu0 %793 }
0x14c5   :  { %v796_v47 = vadd.f32 %v2054_v38, %v794_v46 }
0x14c7   :  { %2547 = vtanh.f32 %v796_v47 }
0x14d1   :  { %v2548_v48 = vpop.eup %2547 }
0x14d2   :  { %v798_v49 = vsub.f32 %v2800_v11, %v2548_v48 }
0x14d4   :  { %800 = vrot.lane.b32.xlu1 %v798_v49, %s2607_s20 }
0x1546   :  { %v801_v50 = vpop.permute.xlu1 %800 }
0x1547   :  { %v803_v51 = vmul.f32 %v2546_v43, %v801_v50 }
0x1549   :  { %805 = vrot.lane.b32.xlu0 %v803_v51, %s2608_s21 }
0x154d   :  { %1170 = vrot.lane.b32.xlu0 %v2069_v57, %s2606_s19 }
0x15bb   :  { %v806_v58 = vpop.permute.xlu0 %805 }
0x15bc   :  { %v2869_v8 = vadd.f32 %v2548_v48, %v806_v58 }
0x15be   :  { %810 = vrot.lane.b32.xlu1 %v2869_v8, %s2606_s19 }
0x15bf   :  { %v2889_v63 = vpop.permute.xlu0 %1170 }
0x1630   :  { %v811_v59 = vpop.permute.xlu1 %810 }
0x1631   :  { %814 = vst.msk [vmem:[#allocation2 + $0x30] sm:$0xff] %vm43_vm1, %v811_v59  ;;  %2270 = vmatmul.mubr.msk.f32.vlgmr.msra.gmra.mrb[6].mxu1 %vm43_vm1, %v811_v59 }
0x1632   :  { %2449 = vmatpush3.bf16.msra.mxu1 %v2851_v54  ;;  %2300 = vmatprep.mubr.msk.f32.mxu1 %vm2604_vm0, %v2605_v4 }
0x1633   :  { %2450 = vmatprep.subr.bf16.mxu1 %v2603_v0 }
0x1636   :  { %2452 = vmatpush3.bf16.msra.mxu1 %v2861_v56 }
0x1637   :  { %2453 = vmatprep.subr.bf16.mxu1 %v2603_v0 }
0x1638   :  { %v931_v60 = vld [vmem:[#allocation2 + $0x30] sm:$0xff] }
0x1639   :  { %2301 = vmatmul.mubr.f32.vlgmr.msra.gmra.mrb[8].mxu1 %v2605_v4  ;;  %2289 = vmatprep.mubr.msk.f32.mxu0 %vm43_vm1, %v931_v60 }
0x163a   :  { %2455 = vmatpush3.bf16.msra.mxu1 %v2851_v54  ;;  %2311 = vmatprep.mubr.msk.f32.mxu1 %vm2604_vm0, %v2605_v4 }
0x163b   :  { %2456 = vmatprep.subr.bf16.mxu1 %v2603_v0 }
0x163e   :  { %2458 = vmatpush3.bf16.msra.mxu1 %v2861_v56 }
0x163f   :  { %2465 = vmatprep.subr.bf16.mxu1 %v2603_v0 }
0x1704   :  { %v885_v61 = vpop.f32.mrb[6].mxu1 }
0x1705   :  { %v2271_v62 = vpop.f32.mrb[7].mxu1  ;;  %v896_v22 = vadd.f32 %v885_v61, %v2700_v9  ;;  %v889_v24 = vadd.f32 %v2057_v23, %v885_v61 }
0x1707   :  { %v2059_v26 = vmul.f32 -1.442695, %v889_v24 }
0x170c   :  { %v1159_v1 = vpop.f32.mrb[8].mxu1 }
0x170d   :  { %v1173_v2 = vadd.f32 %v2889_v63, %v1159_v1  ;;  %v2302_v3 = vpop.f32.mrb[9].mxu1  ;;  %v1163_v7 = vadd.f32 %v1159_v1, %v1092_v6 }
0x170f   :  { %1175 = vrot.lane.b32.xlu1 %v1173_v2, %s2606_s19  ;;  %v2070_v10 = vmul.f32 -1.442695, %v1163_v7 }
0x1711   :  { %2549 = vpow2.f32 %v2070_v10 }
0x171b   :  { %v2550_v11 = vpop.eup %2549 }
0x171c   :  { %v1167_v12 = vadd.f32 1.0, %v2550_v11 }
0x171e   :  { %2551 = vrcp.f32 %v1167_v12  ;;  %v1304_v12 = vld [vmem:[#allocation3 + $0x10] sm:$0xff] }
0x1728   :  { %v2552_v13 = vpop.eup %2551 }
0x1781   :  { %v1176_v14 = vpop.permute.xlu1 %1175 }
0x1782   :  { %v1178_v15 = vmul.f32 %v2552_v13, %v1176_v14 }
0x1784   :  { %1180 = vrot.lane.b32.xlu0 %v1178_v15, %s2606_s19 }
0x17f6   :  { %v1181_v16 = vpop.permute.xlu0 %1180 }
0x17f7   :  { %v1183_v17 = vadd.f32 %v1181_v16, %v1092_v6 }
0x17f9   :  { %2553 = vtanh.f32 %v1183_v17 }
0x17fa   :  { %2555 = vpow2.f32 %v2059_v26 }
0x1803   :  { %v2554_v18 = vpop.eup %2553 }
0x1804   :  { %v1185_v19 = vsub.f32 0.0, %v2554_v18  ;;  %v2556_v27 = vpop.eup %2555 }
0x1805   :  { %v893_v28 = vadd.f32 1.0, %v2556_v27 }
0x1806   :  { %1187 = vrot.lane.b32.xlu1 %v1185_v19, %s2607_s20 }
0x1807   :  { %2557 = vrcp.f32 %v893_v28 }
0x1811   :  { %v2558_v31 = vpop.eup %2557 }
0x1878   :  { %v1188_v20 = vpop.permute.xlu1 %1187 }
0x1879   :  { %v1190_v21 = vmul.f32 %v2552_v13, %v1188_v20 }
0x187b   :  { %1192 = vrot.lane.b32.xlu0 %v1190_v21, %s2608_s21 }
0x187f   :  { %898 = vrot.lane.b32.xlu0 %v896_v22, %s2606_s19 }
0x18ed   :  { %v1193_v29 = vpop.permute.xlu0 %1192 }
0x18ee   :  { %v1195_v30 = vadd.f32 %v2554_v18, %v1193_v29 }
0x18f0   :  { %1199 = vrot.lane.b32.xlu1 %v1195_v30, %s2606_s19 }
0x18f1   :  { %v899_v32 = vpop.permute.xlu0 %898 }
0x18f2   :  { %v901_v33 = vmul.f32 %v2558_v31, %v899_v32 }
0x18f4   :  { %903 = vrot.lane.b32.xlu0 %v901_v33, %s2606_s19  ;;  %v1411_v33 = vld [vmem:[#allocation3 + $0x18] sm:$0xff] }
0x1962   :  { %v1200_v9 = vpop.permute.xlu1 %1199 }
0x1963   :  { %2312 = vmatmul.mubr.msk.f32.vlgmr.msra.gmra.mrb[10].mxu1 %vm43_vm1, %v1200_v9 }
0x1964   :  { %2467 = vmatpush3.bf16.msra.mxu1 %v2851_v54  ;;  %2333 = vmatprep.mubr.msk.f32.mxu1 %vm2604_vm0, %v2605_v4 }
0x1965   :  { %2468 = vmatprep.subr.bf16.mxu1 %v2603_v0 }
0x1966   :  { %v904_v34 = vpop.permute.xlu0 %903 }
0x1967   :  { %v906_v35 = vadd.f32 %v2057_v23, %v904_v34 }
0x1968   :  { %2470 = vmatpush3.bf16.msra.mxu1 %v2861_v56 }
0x1969   :  { %2559 = vtanh.f32 %v906_v35  ;;  %2477 = vmatprep.subr.bf16.mxu1 %v2603_v0 }
0x1973   :  { %v2560_v36 = vpop.eup %2559 }
0x1974   :  { %v908_v37 = vsub.f32 %v2869_v8, %v2560_v36 }
0x1976   :  { %910 = vrot.lane.b32.xlu0 %v908_v37, %s2607_s20 }
0x19e8   :  { %v911_v38 = vpop.permute.xlu0 %910 }
0x19e9   :  { %v913_v39 = vmul.f32 %v2558_v31, %v911_v38 }
0x19eb   :  { %915 = vrot.lane.b32.xlu0 %v913_v39, %s2608_s21 }
0x1a36   :  { %v1269_v40 = vpop.f32.mrb[10].mxu1 }
0x1a37   :  { %v1280_v41 = vadd.f32 %v1269_v40, %v2889_v63  ;;  %v2313_v42 = vpop.f32.mrb[11].mxu1  ;;  %v1273_v46 = vadd.f32 %v1269_v40, %v1197_v45 }
0x1a39   :  { %1282 = vrot.lane.b32.xlu1 %v1280_v41, %s2606_s19  ;;  %v2072_v47 = vmul.f32 -1.442695, %v1273_v46 }
0x1a3b   :  { %2561 = vpow2.f32 %v2072_v47 }
0x1a45   :  { %v2562_v48 = vpop.eup %2561 }
0x1a46   :  { %v1277_v49 = vadd.f32 1.0, %v2562_v48 }
0x1a48   :  { %2563 = vrcp.f32 %v1277_v49 }
0x1a52   :  { %v2564_v50 = vpop.eup %2563 }
0x1a5d   :  { %v916_v43 = vpop.permute.xlu0 %915 }
0x1a5e   :  { %v918_v44 = vadd.f32 %v2560_v36, %v916_v43 }
0x1a60   :  { %920 = vrot.lane.b32.xlu0 %v918_v44, %s2606_s19 }
0x1aab   :  { %v1283_v51 = vpop.permute.xlu1 %1282 }
0x1aac   :  { %v1285_v52 = vmul.f32 %v2564_v50, %v1283_v51 }
0x1aae   :  { %1287 = vrot.lane.b32.xlu1 %v1285_v52, %s2606_s19  ;;  %v1518_v52 = vld [vmem:[#allocation3 + $0x20] sm:$0xff] }
0x1ad2   :  { %v921_v53 = vpop.permute.xlu0 %920 }
0x1ad3   :  { %924 = vst.msk [vmem:[#allocation2 + $0x38] sm:$0xff] %vm43_vm1, %v921_v53 }
0x1ada   :  { %v932_v5 = vld [vmem:[#allocation2 + $0x38] sm:$0xff] }
0x1adb   :  { %2290 = vmatmul.mubr.msk.f32.gmra.mrb[14].mxu0 %vm43_vm1, %v932_v5 }
0x1adc   :  { %2322 = vmatprep.mubr.msk.f32.mxu0 %vm2604_vm0, %v2605_v4 }
0x1b20   :  { %v1288_v55 = vpop.permute.xlu1 %1287 }
0x1b21   :  { %v1290_v57 = vadd.f32 %v1288_v55, %v1197_v45 }
0x1b23   :  { %2565 = vtanh.f32 %v1290_v57 }
0x1b2d   :  { %v2566_v58 = vpop.eup %2565 }
0x1b2e   :  { %v1292_v8 = vsub.f32 %v1195_v30, %v2566_v58 }
0x1b30   :  { %1294 = vrot.lane.b32.xlu1 %v1292_v8, %s2607_s20 }
0x1ba2   :  { %v1295_v59 = vpop.permute.xlu1 %1294 }
0x1ba3   :  { %v1297_v60 = vmul.f32 %v2564_v50, %v1295_v59 }
0x1ba5   :  { %1299 = vrot.lane.b32.xlu1 %v1297_v60, %s2608_s21 }
0x1bae   :  { %v2291_v61 = vpop.f32.mrb[14].mxu0 }
0x1baf   :  { %v1070_v62 = vadd.f32 %v2291_v61, %v2824_v25  ;;  %v1064_v1 = vpop.f32.mrb[15].mxu0 }
0x1bb0   :  { %v1065_v2 = vadd.f32 %v2824_v25, %v1064_v1 }
0x1bb1   :  { %1081 = vst.msk [vmem:[#allocation3 + $0x38] sm:$0xff] %vm1073_vm2, %v1070_v62 }
0x1bb2   :  { %1080 = vst.msk [vmem:[#allocation3 + $0x30] sm:$0xff] %vm1073_vm2, %v1065_v2 }
0x1c17   :  { %v1300_v3 = vpop.permute.xlu1 %1299 }
0x1c18   :  { %v1302_v6 = vadd.f32 %v2566_v58, %v1300_v3 }
0x1c1a   :  { %1306 = vrot.lane.b32.xlu1 %v1302_v6, %s2606_s19 }
0x1c8c   :  { %v1307_v7 = vpop.permute.xlu1 %1306 }
0x1c8d   :  { %2323 = vmatmul.mubr.msk.f32.vlgmr.msra.gmra.mrb[16].mxu0 %vm43_vm1, %v1307_v7 }
0x1c8e   :  { %2473 = vmatpush3.bf16.msra.mxu0 %v2851_v54  ;;  %2344 = vmatprep.mubr.msk.f32.mxu0 %vm2604_vm0, %v2605_v4 }
0x1c8f   :  { %2474 = vmatprep.subr.bf16.mxu0 %v2603_v0 }
0x1c92   :  { %2476 = vmatpush3.bf16.msra.mxu0 %v2861_v56 }
0x1c93   :  { %2483 = vmatprep.subr.bf16.mxu0 %v2603_v0 }
0x1d60   :  { %v1376_v25 = vpop.f32.mrb[16].mxu0 }
0x1d61   :  { %v1387_v10 = vadd.f32 %v1376_v25, %v2889_v63  ;;  %v2324_v11 = vpop.f32.mrb[17].mxu0  ;;  %v1380_v13 = vadd.f32 %v1376_v25, %v1304_v12 }
0x1d63   :  { %1389 = vrot.lane.b32.xlu0 %v1387_v10, %s2606_s19  ;;  %v2074_v14 = vmul.f32 -1.442695, %v1380_v13  ;;  %v1625_v13 = vld [vmem:[#allocation3 + $0x28] sm:$0xff] }
0x1d65   :  { %2567 = vpow2.f32 %v2074_v14 }
0x1d6f   :  { %v2568_v15 = vpop.eup %2567 }
0x1d70   :  { %v1384_v16 = vadd.f32 1.0, %v2568_v15 }
0x1d72   :  { %2569 = vrcp.f32 %v1384_v16 }
0x1d7c   :  { %v2570_v17 = vpop.eup %2569 }
0x1dd5   :  { %v1390_v18 = vpop.permute.xlu0 %1389 }
0x1dd6   :  { %v1392_v19 = vmul.f32 %v2570_v17, %v1390_v18 }
0x1dd8   :  { %1394 = vrot.lane.b32.xlu1 %v1392_v19, %s2606_s19 }
0x1e4a   :  { %v1395_v20 = vpop.permute.xlu1 %1394 }
0x1e4b   :  { %v1397_v21 = vadd.f32 %v1395_v20, %v1304_v12 }
0x1e4d   :  { %2571 = vtanh.f32 %v1397_v21 }
0x1e57   :  { %v2572_v22 = vpop.eup %2571 }
0x1e58   :  { %v1399_v23 = vsub.f32 %v1302_v6, %v2572_v22 }
0x1e5a   :  { %1401 = vrot.lane.b32.xlu0 %v1399_v23, %s2607_s20 }
0x1ecc   :  { %v1402_v24 = vpop.permute.xlu0 %1401 }
0x1ecd   :  { %v1404_v26 = vmul.f32 %v2570_v17, %v1402_v24 }
0x1ecf   :  { %1406 = vrot.lane.b32.xlu1 %v1404_v26, %s2608_s21 }
0x1f41   :  { %v1407_v27 = vpop.permute.xlu1 %1406 }
0x1f42   :  { %v1409_v28 = vadd.f32 %v2572_v22, %v1407_v27 }
0x1f44   :  { %1413 = vrot.lane.b32.xlu0 %v1409_v28, %s2606_s19 }
0x1fb6   :  { %v1414_v29 = vpop.permute.xlu0 %1413 }
0x1fb7   :  { %2334 = vmatmul.mubr.msk.f32.vlgmr.msra.gmra.mrb[12].mxu1 %vm43_vm1, %v1414_v29 }
0x1fb8   :  { %2479 = vmatpush3.bf16.msra.mxu1 %v2851_v54  ;;  %2355 = vmatprep.mubr.msk.f32.mxu1 %vm2604_vm0, %v2605_v4 }
0x1fb9   :  { %2480 = vmatprep.subr.bf16.mxu1 %v2603_v0 }
0x1fbc   :  { %2482 = vmatpush3.bf16.msra.mxu1 %v2861_v56 }
0x1fbd   :  { %2489 = vmatprep.subr.bf16.mxu1 %v2603_v0 }
0x208a   :  { %v1483_v30 = vpop.f32.mrb[12].mxu1 }
0x208b   :  { %v1494_v31 = vadd.f32 %v1483_v30, %v2889_v63  ;;  %v2335_v32 = vpop.f32.mrb[13].mxu1  ;;  %v1487_v9 = vadd.f32 %v1483_v30, %v1411_v33 }
0x208c   :  { %v1732_v32 = vld [vmem:[#allocation3 + $0x30] sm:$0xff] }
0x208d   :  { %1496 = vrot.lane.b32.xlu1 %v1494_v31, %s2606_s19  ;;  %v2076_v34 = vmul.f32 -1.442695, %v1487_v9 }
0x208f   :  { %2573 = vpow2.f32 %v2076_v34 }
0x2099   :  { %v2574_v35 = vpop.eup %2573 }
0x209a   :  { %v1491_v36 = vadd.f32 1.0, %v2574_v35 }
0x209c   :  { %2575 = vrcp.f32 %v1491_v36 }
0x20a6   :  { %v2576_v37 = vpop.eup %2575 }
0x20ff   :  { %v1497_v38 = vpop.permute.xlu1 %1496 }
0x2100   :  { %v1499_v39 = vmul.f32 %v2576_v37, %v1497_v38 }
0x2102   :  { %1501 = vrot.lane.b32.xlu0 %v1499_v39, %s2606_s19 }
0x2174   :  { %v1502_v40 = vpop.permute.xlu0 %1501 }
0x2175   :  { %v1504_v41 = vadd.f32 %v1502_v40, %v1411_v33 }
0x2177   :  { %2577 = vtanh.f32 %v1504_v41 }
0x2181   :  { %v2578_v42 = vpop.eup %2577 }
0x2182   :  { %v1506_v43 = vsub.f32 %v1409_v28, %v2578_v42 }
0x2184   :  { %1508 = vrot.lane.b32.xlu1 %v1506_v43, %s2607_s20 }
0x21f6   :  { %v1509_v44 = vpop.permute.xlu1 %1508 }
0x21f7   :  { %v1511_v45 = vmul.f32 %v2576_v37, %v1509_v44 }
0x21f9   :  { %1513 = vrot.lane.b32.xlu0 %v1511_v45, %s2608_s21 }
0x226b   :  { %v1514_v46 = vpop.permute.xlu0 %1513 }
0x226c   :  { %v1516_v47 = vadd.f32 %v2578_v42, %v1514_v46 }
0x226e   :  { %1520 = vrot.lane.b32.xlu1 %v1516_v47, %s2606_s19 }
0x22e0   :  { %v1521_v48 = vpop.permute.xlu1 %1520 }
0x22e1   :  { %2345 = vmatmul.mubr.msk.f32.vlgmr.msra.gmra.mrb[18].mxu0 %vm43_vm1, %v1521_v48 }
0x22e2   :  { %2485 = vmatpush3.bf16.msra.mxu0 %v2851_v54  ;;  %2366 = vmatprep.mubr.msk.f32.mxu0 %vm2604_vm0, %v2605_v4 }
0x22e3   :  { %2486 = vmatprep.subr.bf16.mxu0 %v2603_v0 }
0x22e6   :  { %2488 = vmatpush3.bf16.msra.mxu0 %v2861_v56 }
0x22e7   :  { %2495 = vmatprep.subr.bf16.mxu0 %v2603_v0 }
0x23b4   :  { %v1590_v49 = vpop.f32.mrb[18].mxu0 }
0x23b5   :  { %v1601_v50 = vadd.f32 %v1590_v49, %v2889_v63  ;;  %v2346_v51 = vpop.f32.mrb[19].mxu0  ;;  %v1594_v53 = vadd.f32 %v1590_v49, %v1518_v52 }
0x23b7   :  { %1603 = vrot.lane.b32.xlu0 %v1601_v50, %s2606_s19  ;;  %v2078_v5 = vmul.f32 -1.442695, %v1594_v53  ;;  %v1839_v50 = vld [vmem:[#allocation3 + $0x38] sm:$0xff] }
0x23b9   :  { %2579 = vpow2.f32 %v2078_v5 }
0x23c3   :  { %v2580_v55 = vpop.eup %2579 }
0x23c4   :  { %v1598_v57 = vadd.f32 1.0, %v2580_v55 }
0x23c6   :  { %2581 = vrcp.f32 %v1598_v57 }
0x23d0   :  { %v2582_v58 = vpop.eup %2581 }
0x2429   :  { %v1604_v8 = vpop.permute.xlu0 %1603 }
0x242a   :  { %v1606_v59 = vmul.f32 %v2582_v58, %v1604_v8 }
0x242c   :  { %1608 = vrot.lane.b32.xlu1 %v1606_v59, %s2606_s19 }
0x249e   :  { %v1609_v60 = vpop.permute.xlu1 %1608 }
0x249f   :  { %v1611_v61 = vadd.f32 %v1609_v60, %v1518_v52 }
0x24a1   :  { %2583 = vtanh.f32 %v1611_v61  ;;  %v1945_v61 = vld [vmem:[%s3022_s7] sm:$0xff] }
0x24ab   :  { %v2584_v62 = vpop.eup %2583 }
0x24ac   :  { %v1613_v1 = vsub.f32 %v1516_v47, %v2584_v62 }
0x24ae   :  { %1615 = vrot.lane.b32.xlu0 %v1613_v1, %s2607_s20  ;;  %v1947_v1 = vld [vmem:[%s3022_s7 + $0x10] sm:$0xff] }
0x2520   :  { %v1616_v2 = vpop.permute.xlu0 %1615 }
0x2521   :  { %v1618_v3 = vmul.f32 %v2582_v58, %v1616_v2 }
0x2523   :  { %1620 = vrot.lane.b32.xlu1 %v1618_v3, %s2608_s21  ;;  %v1948_v3 = vld [vmem:[%s3022_s7 + $0x18] sm:$0xff] }
0x2595   :  { %v1621_v6 = vpop.permute.xlu1 %1620 }
0x2596   :  { %v1623_v7 = vadd.f32 %v2584_v62, %v1621_v6  ;;  %v1946_v62 = vld [vmem:[%s3022_s7 + $0x8] sm:$0xff]  ;;  %v2499_v6 = vpack.c.bf16 %v1948_v3, %v1947_v1 }
0x2597   :  { %v2496_v2 = vpack.c.bf16 %v1946_v62, %v1945_v61 }
0x2598   :  { %1627 = vrot.lane.b32.xlu0 %v1623_v7, %s2606_s19 }
0x260a   :  { %v1628_v25 = vpop.permute.xlu0 %1627 }
0x260b   :  { %2356 = vmatmul.mubr.msk.f32.vlgmr.msra.gmra.mrb[14].mxu1 %vm43_vm1, %v1628_v25 }
0x260c   :  { %2491 = vmatpush3.bf16.msra.mxu1 %v2851_v54  ;;  %2377 = vmatprep.mubr.msk.f32.mxu1 %vm2604_vm0, %v2605_v4 }
0x260d   :  { %2492 = vmatprep.subr.bf16.mxu1 %v2603_v0 }
0x2610   :  { %2494 = vmatpush3.bf16.msra.mxu1 %v2861_v56 }
0x26de   :  { %v1697_v10 = vpop.f32.mrb[14].mxu1 }
0x26df   :  { %v1708_v11 = vadd.f32 %v1697_v10, %v2889_v63  ;;  %v2357_v12 = vpop.f32.mrb[15].mxu1  ;;  %v1701_v14 = vadd.f32 %v1697_v10, %v1625_v13 }
0x26e1   :  { %1710 = vrot.lane.b32.xlu1 %v1708_v11, %s2606_s19  ;;  %v2080_v15 = vmul.f32 -1.442695, %v1701_v14 }
0x26e3   :  { %2585 = vpow2.f32 %v2080_v15 }
0x26ed   :  { %v2586_v16 = vpop.eup %2585 }
0x26ee   :  { %v1705_v17 = vadd.f32 1.0, %v2586_v16 }
0x26f0   :  { %2587 = vrcp.f32 %v1705_v17 }
0x26fa   :  { %v2588_v54 = vpop.eup %2587 }
0x2753   :  { %v1711_v18 = vpop.permute.xlu1 %1710 }
0x2754   :  { %v1713_v19 = vmul.f32 %v2588_v54, %v1711_v18 }
0x2756   :  { %1715 = vrot.lane.b32.xlu0 %v1713_v19, %s2606_s19 }
0x27c8   :  { %v1716_v20 = vpop.permute.xlu0 %1715 }
0x27c9   :  { %v1718_v56 = vadd.f32 %v1716_v20, %v1625_v13  ;;  %v2085_v13 = vld [vmem:[%s3023_s8] ss:$0 sm:$0xff] }
0x27cb   :  { %2589 = vtanh.f32 %v1718_v56 }
0x27d5   :  { %v2590_v21 = vpop.eup %2589 }
0x27d6   :  { %v1720_v22 = vsub.f32 %v1623_v7, %v2590_v21 }
0x27d8   :  { %1722 = vrot.lane.b32.xlu1 %v1720_v22, %s2607_s20 }
0x284a   :  { %v1723_v23 = vpop.permute.xlu1 %1722 }
0x284b   :  { %v1725_v24 = vmul.f32 %v2588_v54, %v1723_v23 }
0x284d   :  { %1727 = vrot.lane.b32.xlu0 %v1725_v24, %s2608_s21 }
0x28bf   :  { %v1728_v26 = vpop.permute.xlu0 %1727 }
0x28c0   :  { %v1730_v27 = vadd.f32 %v2590_v21, %v1728_v26 }
0x28c2   :  { %1734 = vrot.lane.b32.xlu1 %v1730_v27, %s2606_s19 }
0x2934   :  { %v1735_v28 = vpop.permute.xlu1 %1734 }
0x2935   :  { %2367 = vmatmul.mubr.msk.f32.vlgmr.msra.gmra.mrb[20].mxu0 %vm43_vm1, %v1735_v28 }
0x2936   :  { %2388 = vmatprep.mubr.msk.f32.mxu0 %vm2604_vm0, %v2605_v4  ;;  %2497 = vmatpush3.bf16.msra.mxu0 %v2496_v2 }
0x2937   :  { %2498 = vmatprep.subr.bf16.mxu0 %v2603_v0 }
0x293a   :  { %2500 = vmatpush3.bf16.msra.mxu0 %v2499_v6 }
0x2a08   :  { %v1804_v29 = vpop.f32.mrb[20].mxu0 }
0x2a09   :  { %v1815_v30 = vadd.f32 %v1804_v29, %v2889_v63  ;;  %v2368_v31 = vpop.f32.mrb[21].mxu0  ;;  %v1808_v33 = vadd.f32 %v1804_v29, %v1732_v32 }
0x2a0b   :  { %1817 = vrot.lane.b32.xlu0 %v1815_v30, %s2606_s19  ;;  %v2082_v9 = vmul.f32 -1.442695, %v1808_v33 }
0x2a0d   :  { %2591 = vpow2.f32 %v2082_v9 }
0x2a17   :  { %v2592_v34 = vpop.eup %2591 }
0x2a18   :  { %v1812_v35 = vadd.f32 1.0, %v2592_v34 }
0x2a1a   :  { %2593 = vrcp.f32 %v1812_v35 }
0x2a24   :  { %v2594_v36 = vpop.eup %2593 }
0x2a7d   :  { %v1818_v37 = vpop.permute.xlu0 %1817 }
0x2a7e   :  { %v1820_v38 = vmul.f32 %v2594_v36, %v1818_v37 }
0x2a80   :  { %1822 = vrot.lane.b32.xlu1 %v1820_v38, %s2606_s19 }
0x2af2   :  { %v1823_v39 = vpop.permute.xlu1 %1822 }
0x2af3   :  { %v1825_v4 = vadd.f32 %v1823_v39, %v1732_v32 }
0x2af5   :  { %2595 = vtanh.f32 %v1825_v4 }
0x2aff   :  { %v2596_v40 = vpop.eup %2595 }
0x2b00   :  { %v1827_v41 = vsub.f32 %v1730_v27, %v2596_v40 }
0x2b02   :  { %1829 = vrot.lane.b32.xlu0 %v1827_v41, %s2607_s20 }
0x2b74   :  { %v1830_v42 = vpop.permute.xlu0 %1829 }
0x2b75   :  { %v1832_v43 = vmul.f32 %v2594_v36, %v1830_v42 }
0x2b77   :  { %1834 = vrot.lane.b32.xlu1 %v1832_v43, %s2608_s21 }
0x2be9   :  { %v1835_v44 = vpop.permute.xlu1 %1834 }
0x2bea   :  { %v1837_v45 = vadd.f32 %v2596_v40, %v1835_v44 }
0x2bec   :  { %1841 = vrot.lane.b32.xlu0 %v1837_v45, %s2606_s19 }
0x2c5e   :  { %v1842_v46 = vpop.permute.xlu0 %1841 }
0x2c5f   :  { %2378 = vmatmul.mubr.msk.f32.vlgmr.msra.gmra.mrb[16].mxu1 %vm43_vm1, %v1842_v46 }
0x2d32   :  { %v1911_v47 = vpop.f32.mrb[16].mxu1 }
0x2d33   :  { %v1922_v48 = vadd.f32 %v1911_v47, %v2889_v63  ;;  %v2379_v49 = vpop.f32.mrb[17].mxu1  ;;  %v1915_v51 = vadd.f32 %v1911_v47, %v1839_v50 }
0x2d35   :  { %1924 = vrot.lane.b32.xlu1 %v1922_v48, %s2606_s19  ;;  %v2084_v52 = vmul.f32 -1.442695, %v1915_v51 }
0x2d37   :  { %2597 = vpow2.f32 %v2084_v52 }
0x2d41   :  { %v2598_v53 = vpop.eup %2597 }
0x2d42   :  { %v1919_v5 = vadd.f32 1.0, %v2598_v53 }
0x2d44   :  { %2599 = vrcp.f32 %v1919_v5 }
0x2d4e   :  { %v2600_v55 = vpop.eup %2599 }
0x2da7   :  { %v1925_v57 = vpop.permute.xlu1 %1924 }
0x2da8   :  { %v1927_v58 = vmul.f32 %v2600_v55, %v1925_v57 }
0x2daa   :  { %1929 = vrot.lane.b32.xlu0 %v1927_v58, %s2606_s19 }
0x2e1c   :  { %v1930_v8 = vpop.permute.xlu0 %1929 }
0x2e1d   :  { %v1932_v59 = vadd.f32 %v1930_v8, %v1839_v50 }
0x2e1f   :  { %2601 = vtanh.f32 %v1932_v59 }
0x2e29   :  { %v2602_v60 = vpop.eup %2601 }
0x2e2a   :  { %v1934_v63 = vsub.f32 %v1837_v45, %v2602_v60 }
0x2e2c   :  { %1936 = vrot.lane.b32.xlu1 %v1934_v63, %s2607_s20 }
0x2e9e   :  { %v1937_v7 = vpop.permute.xlu1 %1936 }
0x2e9f   :  { %v1939_v25 = vmul.f32 %v2600_v55, %v1937_v7 }
0x2ea1   :  { %1941 = vrot.lane.b32.xlu0 %v1939_v25, %s2608_s21 }
0x2f13   :  { %v1942_v10 = vpop.permute.xlu0 %1941 }
0x2f14   :  { %v1944_v11 = vadd.f32 %v2602_v60, %v1942_v10 }
0x2f16   :  { %1957 = vrot.lane.b32.xlu1 %v1944_v11, %s2606_s19 }
0x2f88   :  { %v1958_v12 = vpop.permute.xlu1 %1957 }
0x2f89   :  { %2389 = vmatmul.mubr.msk.f32.vlgmr.msra.gmra.mrb[22].mxu0 %vm43_vm1, %v1958_v12 }
0x305c   :  { %v2027_v14 = vpop.f32.mrb[22].mxu0 }
0x305d   :  { %v2028_v15 = vadd.f32 %v2085_v13, %v2027_v14  ;;  %v2390_v0 = vpop.f32.mrb[23].mxu0 }
0x305f   :  { %2032 = vst.msk [vmem:[%s3024_s9] sm:$0xff] %vm2031_vm3, %v2028_v15 }

</bundles_post_ra>
